<compile_context>
chip_gen: v5e
topology: v5e:2x2
jax: 0.10.0
libtpu: 0.0.40
codegen_flags: <defaults>
</compile_context>

<pallas_src>
import jax
import jax.numpy as jnp
from jax.experimental import pallas as pl
from jax.experimental.pallas import tpu as pltpu

_LANE = 128


def _round_up(n, m):
    return (n + m - 1) // m * m


def _tssn_feature_kernel(p_ref, pool_ref, w1_ref, b1_ref, w2_ref, b2_ref, out_ref):
    # conv-as-matmul: bf16 im2col patches @ bf16 conv weight, f32 accumulate.
    h = jnp.dot(p_ref[...], w1_ref[...],
                preferred_element_type=jnp.float32)              # [Bt*HW, C1p]
    h = jnp.maximum(h + b1_ref[...], 0.0)
    # Global average pool as an MXU matmul: block-diagonal ones matrix sums the
    # HW rows of each sample (the 1/HW mean scale is folded into w2).
    pooled = jnp.dot(pool_ref[...], h.astype(jnp.bfloat16),
                     preferred_element_type=jnp.float32)         # [Bt, C1p]
    # Projection head (w2 is pre-scaled by 1/HW).
    out = jnp.dot(pooled.astype(jnp.bfloat16), w2_ref[...],
                  preferred_element_type=jnp.float32) + b2_ref[...]
    out_ref[...] = out.astype(out_ref.dtype)                     # dense (Bt, Dp) store


def feature_extractor(x, params, *, block_b=8):
    """Shared-weight feature extractor.  x: [B, C, H, W] f32 -> [B, D] f32."""
    w1, b1, w2, b2 = params
    B, C, H, W = x.shape
    HW = H * W
    CK, C1 = w1.shape
    D = w2.shape[1]
    C1p = _round_up(C1, _LANE)
    Dp = _round_up(D, _LANE)
    Bpad = _round_up(B, block_b)
    grid_b = Bpad // block_b      # grows with batch -> v7x megacore gets >=2 steps

    # im2col in NHWC so patches come out as [B, H, W, CK] directly (no 9x transpose),
    # in bf16 to halve the HBM write of the patch tensor.
    x_nhwc = jnp.transpose(x, (0, 2, 3, 1)).astype(jnp.bfloat16)
    patches = jax.lax.conv_general_dilated_patches(
        x_nhwc, filter_shape=(3, 3), window_strides=(1, 1), padding="SAME",
        dimension_numbers=("NHWC", "HWIO", "NHWC"))              # [B, H, W, CK]
    patches = patches.reshape(B * HW, CK)
    if Bpad != B:
        patches = jnp.pad(patches, ((0, (Bpad - B) * HW), (0, 0)))

    # Block-diagonal pooling matrix: row b selects the HW rows of sample b.
    pool = jnp.repeat(jnp.eye(block_b, dtype=jnp.bfloat16), HW, axis=1)  # [Bt, Bt*HW]

    # Pad heads to lane width 128 (dense vregs / unmasked stores); fold 1/HW into w2.
    w1p = jnp.zeros((CK, C1p), jnp.bfloat16).at[:, :C1].set(w1.astype(jnp.bfloat16))
    b1p = jnp.zeros((1, C1p), jnp.float32).at[:, :C1].set(b1)
    w2p = jnp.zeros((C1p, Dp), jnp.bfloat16).at[:C1, :D].set((w2 / HW).astype(jnp.bfloat16))
    b2p = jnp.zeros((1, Dp), jnp.float32).at[:, :D].set(b2)

    out = pl.pallas_call(
        _tssn_feature_kernel,
        out_shape=jax.ShapeDtypeStruct((Bpad, Dp), jnp.float32),
        grid_spec=pltpu.PrefetchScalarGridSpec(
            num_scalar_prefetch=0,
            grid=(grid_b,),
            in_specs=[
                # per-step slab of Bt samples' patches, already flattened to 2D
                pl.BlockSpec((block_b * HW, CK), lambda g: (g, 0)),
                # shared constants: same full block every grid step
                pl.BlockSpec((block_b, block_b * HW), lambda g: (0, 0)),
                pl.BlockSpec((CK, C1p), lambda g: (0, 0)),
                pl.BlockSpec((1, C1p), lambda g: (0, 0)),
                pl.BlockSpec((C1p, Dp), lambda g: (0, 0)),
                pl.BlockSpec((1, Dp), lambda g: (0, 0)),
            ],
            out_specs=pl.BlockSpec((block_b, Dp), lambda g: (g, 0)),
        ),
        compiler_params=pltpu.CompilerParams(
            dimension_semantics=("parallel",)),
    )(patches, pool, w1p, b1p, w2p, b2p)
    return out[:B, :D]


def init_params(key, in_channels, hidden_channels, output_dim):
    """Deterministic synthetic parameters (no checkpoint loading)."""
    k1, k2, k3, k4 = jax.random.split(key, 4)
    ck = in_channels * 3 * 3
    w1 = jax.random.normal(k1, (ck, hidden_channels), jnp.float32) * (1.0 / ck) ** 0.5
    b1 = jax.random.normal(k2, (1, hidden_channels), jnp.float32) * 0.01
    w2 = jax.random.normal(k3, (hidden_channels, output_dim), jnp.float32) * (1.0 / hidden_channels) ** 0.5
    b2 = jax.random.normal(k4, (1, output_dim), jnp.float32) * 0.01
    return (w1, b1, w2, b2)


@jax.jit
def tssn_forward(anchor, positive, negative, params):
    """Equivalent of tSSN.forward: same extractor (shared weights) on all three."""
    stacked = jnp.concatenate([anchor, positive, negative], axis=0)  # [3B, C, H, W]
    feats = feature_extractor(stacked, params)                       # [3B, D]
    B = anchor.shape[0]
    return feats[:B], feats[B:2 * B], feats[2 * B:]


def _reference_features(x, params):
    """Pure-JAX f32 reference of the same synthetic extractor (for sanity check)."""
    w1, b1, w2, b2 = params
    B, C, H, W = x.shape
    x_nhwc = jnp.transpose(x, (0, 2, 3, 1))
    patches = jax.lax.conv_general_dilated_patches(
        x_nhwc, filter_shape=(3, 3), window_strides=(1, 1), padding="SAME",
        dimension_numbers=("NHWC", "HWIO", "NHWC"))
    patches = patches.reshape(B, H * W, -1)
    h = jnp.maximum(jnp.einsum("bpk,kc->bpc", patches, w1) + b1, 0.0)
    pooled = jnp.mean(h, axis=1)
    return pooled @ w2 + b2


if __name__ == "__main__":
    B, C, H, W = 2, 4, 16, 16
    hidden_channels = 32
    output_dim = 32

    key = jax.random.PRNGKey(0)
    ka, kp, kn, kw = jax.random.split(key, 4)
    anchor = jax.random.normal(ka, (B, C, H, W), jnp.float32)
    positive = jax.random.normal(kp, (B, C, H, W), jnp.float32)
    negative = jax.random.normal(kn, (B, C, H, W), jnp.float32)

    params = init_params(kw, C, hidden_channels, output_dim)

    anchor_feat, positive_feat, negative_feat = tssn_forward(
        anchor, positive, negative, params)
    jax.block_until_ready((anchor_feat, positive_feat, negative_feat))

    assert anchor_feat.shape == (B, output_dim)
    assert positive_feat.shape == (B, output_dim)
    assert negative_feat.shape == (B, output_dim)

    # Loose-tolerance check vs. an f32 reference (kernel uses bf16 MXU inputs).
    ref = _reference_features(anchor, params)
    assert jnp.allclose(anchor_feat, ref, rtol=1e-1, atol=1e-1), "mismatch vs reference"

    print("KERNEL_OK")
</pallas_src>

<mosaic_0001>
module attributes {stable_mosaic.version = 11 : i64} {
  func.func @_tssn_feature_kernel(%arg0: i32, %arg1: memref<2048x36xbf16, #tpu.memory_space<vmem>>, %arg2: memref<8x2048xbf16, #tpu.memory_space<vmem>>, %arg3: memref<36x128xbf16, #tpu.memory_space<vmem>>, %arg4: memref<1x128xf32, #tpu.memory_space<vmem>>, %arg5: memref<128x128xbf16, #tpu.memory_space<vmem>>, %arg6: memref<1x128xf32, #tpu.memory_space<vmem>>, %arg7: memref<8x128xf32, #tpu.memory_space<vmem>>) attributes {dimension_semantics = [#tpu.dimension_semantics<parallel>], iteration_bounds = array<i64: 1>, scalar_prefetch = 0 : i64, scratch_operands = 0 : i64, tpu.core_type = #tpu.core_type<tc>, window_params = [{transform_indices = @transform_0, window_bounds = array<i64: 2048, 36>}, {pipeline_mode = #tpu.pipeline_mode<synchronous>, transform_indices = @transform_1, window_bounds = array<i64: 8, 2048>}, {pipeline_mode = #tpu.pipeline_mode<synchronous>, transform_indices = @transform_2, window_bounds = array<i64: 36, 128>}, {pipeline_mode = #tpu.pipeline_mode<synchronous>, transform_indices = @transform_3, window_bounds = array<i64: 1, 128>}, {pipeline_mode = #tpu.pipeline_mode<synchronous>, transform_indices = @transform_4, window_bounds = array<i64: 128, 128>}, {pipeline_mode = #tpu.pipeline_mode<synchronous>, transform_indices = @transform_5, window_bounds = array<i64: 1, 128>}, {transform_indices = @transform_6, window_bounds = array<i64: 8, 128>}]} {
    %c0 = arith.constant 0 : index
    %c0_0 = arith.constant 0 : index
    %0 = vector.load %arg1[%c0, %c0_0] : memref<2048x36xbf16, #tpu.memory_space<vmem>>, vector<2048x36xbf16>
    %c0_1 = arith.constant 0 : index
    %c0_2 = arith.constant 0 : index
    %1 = vector.load %arg3[%c0_1, %c0_2] : memref<36x128xbf16, #tpu.memory_space<vmem>>, vector<36x128xbf16>
    %cst = arith.constant dense<0.000000e+00> : vector<2048x128xf32>
    %2 = tpu.matmul %0, %1, %cst {dimension_numbers = #tpu.dot_dimension_numbers<[1], [0], [0], [1], [0, 0, 1, 1], [], []>} : vector<2048x36xbf16>, vector<36x128xbf16>, vector<2048x128xf32> -> vector<2048x128xf32>
    %c0_3 = arith.constant 0 : index
    %c0_4 = arith.constant 0 : index
    %3 = vector.load %arg4[%c0_3, %c0_4] : memref<1x128xf32, #tpu.memory_space<vmem>>, vector<1x128xf32>
    %4 = vector.broadcast %3 : vector<1x128xf32> to vector<2048x128xf32>
    %5 = arith.addf %2, %4 : vector<2048x128xf32>
    %cst_5 = arith.constant 0.000000e+00 : f32
    %6 = vector.broadcast %cst_5 : f32 to vector<2048x128xf32>
    %7 = arith.maximumf %5, %6 : vector<2048x128xf32>
    %c0_6 = arith.constant 0 : index
    %c0_7 = arith.constant 0 : index
    %8 = vector.load %arg2[%c0_6, %c0_7] : memref<8x2048xbf16, #tpu.memory_space<vmem>>, vector<8x2048xbf16>
    %9 = arith.truncf %7 : vector<2048x128xf32> to vector<2048x128xbf16>
    %cst_8 = arith.constant dense<0.000000e+00> : vector<8x128xf32>
    %10 = tpu.matmul %8, %9, %cst_8 {dimension_numbers = #tpu.dot_dimension_numbers<[1], [0], [0], [1], [0, 0, 1, 1], [], []>} : vector<8x2048xbf16>, vector<2048x128xbf16>, vector<8x128xf32> -> vector<8x128xf32>
    %11 = arith.truncf %10 : vector<8x128xf32> to vector<8x128xbf16>
    %c0_9 = arith.constant 0 : index
    %c0_10 = arith.constant 0 : index
    %12 = vector.load %arg5[%c0_9, %c0_10] : memref<128x128xbf16, #tpu.memory_space<vmem>>, vector<128x128xbf16>
    %cst_11 = arith.constant dense<0.000000e+00> : vector<8x128xf32>
    %13 = tpu.matmul %11, %12, %cst_11 {dimension_numbers = #tpu.dot_dimension_numbers<[1], [0], [0], [1], [0, 0, 1, 1], [], []>} : vector<8x128xbf16>, vector<128x128xbf16>, vector<8x128xf32> -> vector<8x128xf32>
    %c0_12 = arith.constant 0 : index
    %c0_13 = arith.constant 0 : index
    %14 = vector.load %arg6[%c0_12, %c0_13] : memref<1x128xf32, #tpu.memory_space<vmem>>, vector<1x128xf32>
    %15 = vector.broadcast %14 : vector<1x128xf32> to vector<8x128xf32>
    %16 = arith.addf %13, %15 : vector<8x128xf32>
    %c0_14 = arith.constant 0 : index
    %c0_15 = arith.constant 0 : index
    %17 = vector.load %arg7[%c0_14, %c0_15] : memref<8x128xf32, #tpu.memory_space<vmem>>, vector<8x128xf32>
    tpu.vector_store %arg7[%c0_14, %c0_15], %16 {strides = array<i32>} : memref<8x128xf32, #tpu.memory_space<vmem>>, vector<8x128xf32>,
    return
  }
  func.func @transform_0(%arg0: i32) -> (i32, i32) {
    %c0_i32 = arith.constant 0 : i32
    %c0_i32_0 = arith.constant 0 : i32
    return %arg0, %c0_i32 : i32, i32
  }
  func.func @transform_1(%arg0: i32) -> (i32, i32) {
    %c0_i32 = arith.constant 0 : i32
    %c0_i32_0 = arith.constant 0 : i32
    %c0_i32_1 = arith.constant 0 : i32
    return %c0_i32, %c0_i32_0 : i32, i32
  }
  func.func @transform_2(%arg0: i32) -> (i32, i32) {
    %c0_i32 = arith.constant 0 : i32
    %c0_i32_0 = arith.constant 0 : i32
    %c0_i32_1 = arith.constant 0 : i32
    return %c0_i32, %c0_i32_0 : i32, i32
  }
  func.func @transform_3(%arg0: i32) -> (i32, i32) {
    %c0_i32 = arith.constant 0 : i32
    %c0_i32_0 = arith.constant 0 : i32
    %c0_i32_1 = arith.constant 0 : i32
    return %c0_i32, %c0_i32_0 : i32, i32
  }
  func.func @transform_4(%arg0: i32) -> (i32, i32) {
    %c0_i32 = arith.constant 0 : i32
    %c0_i32_0 = arith.constant 0 : i32
    %c0_i32_1 = arith.constant 0 : i32
    return %c0_i32, %c0_i32_0 : i32, i32
  }
  func.func @transform_5(%arg0: i32) -> (i32, i32) {
    %c0_i32 = arith.constant 0 : i32
    %c0_i32_0 = arith.constant 0 : i32
    %c0_i32_1 = arith.constant 0 : i32
    return %c0_i32, %c0_i32_0 : i32, i32
  }
  func.func @transform_6(%arg0: i32) -> (i32, i32) {
    %c0_i32 = arith.constant 0 : i32
    %c0_i32_0 = arith.constant 0 : i32
    return %arg0, %c0_i32 : i32, i32
  }
}

</mosaic_0001>

<bundles_post_ra>
// kernel: tssn_forward.1
= control target key start
LH: loop header
LB: loop body
LE: loop exit
PB: predicated region body
PF: predicated region fallthrough
CT: control target
= control target key end

     0   :  { %vm1329_vm0 = vcmask 1041408   ;;  %vm944_vm1 = vcmask 293888   ;;  %s4952_s2 = inlined_call_operand.vmem [shape: bf16[36,128], index: 2, kind: input, shape index: {}]   ;;  %s4953_s3 = inlined_call_operand.vmem [shape: f32[1,128], index: 3, kind: input, shape index: {}]   ;;  %s4954_s0 = inlined_call_operand.vmem [shape: bf16[2048,36], index: 0, kind: input, shape index: {}]   ;;  %s4955_s1 = inlined_call_operand.vmem [shape: bf16[8,2048], index: 1, kind: input, shape index: {}]   ;;  %s4956_s5 = inlined_call_operand.vmem [shape: f32[1,128], index: 5, kind: input, shape index: {}]   ;;  %s4957_s4 = inlined_call_operand.vmem [shape: bf16[128,128], index: 4, kind: input, shape index: {}]   ;;  %s4958_s6 = inlined_call_operand.vmem [shape: f32[8,128], index: 6, kind: output, shape index: {}]  }
   0x1   :  { %v284_v0 = vld [vmem:[%s4952_s2 + $0x10] sm:$0x3]  ;;  %v3534_v4 = vld [vmem:[%s4952_s2 + $0x8] sm:$0xff]  ;;  %v3533_v5 = vld [vmem:[%s4952_s2] sm:$0xff] }
   0x2   :  { %v938_v1 = vunpack.c.l.b16 %v284_v0  ;;  %v3405_v6 = vld [vmem:[%s4954_s0] sm:$0xff]  ;;  %v3406_v7 = vld [vmem:[%s4954_s0 + $0x8] sm:$0xff]  ;;  %v3407_v8 = vld [vmem:[%s4954_s0 + $0x10] sm:$0xff] }
   0x3   :  { %v3408_v9 = vld [vmem:[%s4954_s0 + $0x18] sm:$0xff]  ;;  %v3409_v10 = vld [vmem:[%s4954_s0 + $0x20] sm:$0xff]  ;;  %v3410_v11 = vld [vmem:[%s4954_s0 + $0x28] sm:$0xff] }
   0x4   :  { %v941_v2 = vpack.c.b16 %v938_v1, %v938_v1  ;;  %v3501_v12 = vld [vmem:[%s4954_s0 + $0x300] sm:$0xff]  ;;  %v3411_v13 = vld [vmem:[%s4954_s0 + $0x30] sm:$0xff]  ;;  %v3502_v14 = vld [vmem:[%s4954_s0 + $0x308] sm:$0xff] }
   0x5   :  { %v3412_v15 = vld [vmem:[%s4954_s0 + $0x38] sm:$0xff]  ;;  %v3503_v16 = vld [vmem:[%s4954_s0 + $0x310] sm:$0xff]  ;;  %v3413_v17 = vld [vmem:[%s4954_s0 + $0x40] sm:$0xff] }
   0x6   :  { %v1331_v3 = vsel %vm1329_vm0, %v941_v2, 0  ;;  %v3504_v18 = vld [vmem:[%s4954_s0 + $0x318] sm:$0xff]  ;;  %v3654_v20 = vld [vmem:[%s4953_s3] ss:$0 sm:$0xff]  ;;  %v3414_v27 = vld [vmem:[%s4954_s0 + $0x48] sm:$0xff] }
   0x7   :  { %1338 = vmatpush.bf16.msra.mxu0 %v1331_v3  ;;  %3543 = vmatpush.bf16.msra.mxu1 %v1331_v3  ;;  %v3505_v28 = vld [vmem:[%s4954_s0 + $0x320] sm:$0xff]  ;;  %v3415_v36 = vld [vmem:[%s4954_s0 + $0x50] sm:$0xff]  ;;  %v3506_v37 = vld [vmem:[%s4954_s0 + $0x328] sm:$0xff] }
   0x8   :  { %3544 = vmatpush.bf16.msra.mxu2 %v1331_v3  ;;  %3545 = vmatpush.bf16.msra.mxu3 %v1331_v3  ;;  %v3446_v42 = vld [vmem:[%s4954_s0 + $0x148] sm:$0xff]  ;;  %v3416_v46 = vld [vmem:[%s4954_s0 + $0x58] sm:$0xff]  ;;  %v3507_v47 = vld [vmem:[%s4954_s0 + $0x330] sm:$0xff] }
   0x9   :  { %v3447_v52 = vld [vmem:[%s4954_s0 + $0x150] sm:$0xff]  ;;  %v3417_v56 = vld [vmem:[%s4954_s0 + $0x60] sm:$0xff]  ;;  %v3508_v57 = vld [vmem:[%s4954_s0 + $0x338] sm:$0xff] }
   0xa   :  { %v3448_v60 = vld [vmem:[%s4954_s0 + $0x158] sm:$0xff]  ;;  %v3418_v61 = vld [vmem:[%s4954_s0 + $0x68] sm:$0xff]  ;;  %v3509_v62 = vld [vmem:[%s4954_s0 + $0x340] sm:$0xff] }
   0xb   :  { %1339 = vmatpush.bf16.msra.mxu0 %v3534_v4  ;;  %3546 = vmatpush.bf16.msra.mxu1 %v3534_v4  ;;  %v3449_v2 = vld [vmem:[%s4954_s0 + $0x160] sm:$0xff] }
   0xc   :  { %3547 = vmatpush.bf16.msra.mxu2 %v3534_v4  ;;  %3548 = vmatpush.bf16.msra.mxu3 %v3534_v4  ;;  %v3419_v4 = vld [vmem:[%s4954_s0 + $0x70] sm:$0xff] }
   0xf   :  { %1340 = vmatpush.bf16.msra.mxu0 %v3533_v5  ;;  %3549 = vmatpush.bf16.msra.mxu1 %v3533_v5 }
  0x10   :  { %3550 = vmatpush.bf16.msra.mxu2 %v3533_v5  ;;  %3551 = vmatpush.bf16.msra.mxu3 %v3533_v5  ;;  %v3510_v5 = vld [vmem:[%s4954_s0 + $0x348] sm:$0xff] }
  0x12   :  { %3245 = vmatmul.msk.bf16.vlgmr.msra.gmra.mxu0 %vm944_vm1, %v3405_v6  ;;  %3286 = vmatmul.msk.bf16.vlgmr.msra.gmra.mxu1 %vm944_vm1, %v3446_v42 }
  0x13   :  { %3341 = vmatmul.msk.bf16.vlgmr.msra.gmra.mxu3 %vm944_vm1, %v3501_v12  ;;  %v3420_v12 = vld [vmem:[%s4954_s0 + $0x78] sm:$0xff] }
  0x22   :  { %3246 = vmatmul.msk.bf16.gmra.mxu0 %vm944_vm1, %v3406_v7  ;;  %3287 = vmatmul.msk.bf16.gmra.mxu1 %vm944_vm1, %v3447_v52  ;;  %v3452_v52 = vld [vmem:[%s4954_s0 + $0x178] sm:$0xff] }
  0x23   :  { %3342 = vmatmul.msk.bf16.gmra.mxu3 %vm944_vm1, %v3502_v14 }
  0x32   :  { %3247 = vmatmul.msk.bf16.gmra.mxu0 %vm944_vm1, %v3407_v8  ;;  %3288 = vmatmul.msk.bf16.gmra.mxu1 %vm944_vm1, %v3448_v60 }
  0x33   :  { %3343 = vmatmul.msk.bf16.gmra.mxu3 %vm944_vm1, %v3503_v16 }
  0x42   :  { %3248 = vmatmul.msk.bf16.gmra.mxu0 %vm944_vm1, %v3408_v9  ;;  %3289 = vmatmul.msk.bf16.gmra.mxu1 %vm944_vm1, %v3449_v2  ;;  %v3475_v9 = vld [vmem:[%s4954_s0 + $0x230] sm:$0xff]  ;;  %v3453_v2 = vld [vmem:[%s4954_s0 + $0x180] sm:$0xff] }
  0x43   :  { %3344 = vmatmul.msk.bf16.gmra.mxu3 %vm944_vm1, %v3504_v18  ;;  %3315 = vmatmul.msk.bf16.vlgmr.msra.gmra.mxu2 %vm944_vm1, %v3475_v9 }
  0x52   :  { %3249 = vmatmul.msk.bf16.gmra.mxu0 %vm944_vm1, %v3409_v10  ;;  %v3450_v10 = vld [vmem:[%s4954_s0 + $0x168] sm:$0xff] }
  0x53   :  { %3345 = vmatmul.msk.bf16.gmra.mxu3 %vm944_vm1, %v3505_v28  ;;  %3290 = vmatmul.msk.bf16.gmra.mxu1 %vm944_vm1, %v3450_v10 }
  0x62   :  { %3250 = vmatmul.msk.bf16.gmra.mxu0 %vm944_vm1, %v3410_v11 }
  0x63   :  { %3346 = vmatmul.msk.bf16.gmra.mxu3 %vm944_vm1, %v3506_v37 }
  0x72   :  { %3251 = vmatmul.msk.bf16.gmra.mxu0 %vm944_vm1, %v3411_v13  ;;  %v3511_v13 = vld [vmem:[%s4954_s0 + $0x350] sm:$0xff] }
  0x73   :  { %3347 = vmatmul.msk.bf16.gmra.mxu3 %vm944_vm1, %v3507_v47 }
  0x82   :  { %3252 = vmatmul.msk.bf16.gmra.mxu0 %vm944_vm1, %v3412_v15 }
  0x83   :  { %3348 = vmatmul.msk.bf16.gmra.mxu3 %vm944_vm1, %v3508_v57 }
  0x8f   :  { %v1342_v19 = vpop.f32.mrf.mxu0 }
  0x90   :  { %v1343_v21 = vadd.f32 %v3654_v20, %v1342_v19 }
  0x92   :  { %3253 = vmatmul.msk.bf16.gmra.mxu0 %vm944_vm1, %v3413_v17  ;;  %v1982_v24 = vmax.f32 %v1343_v21, 0.0  ;;  %v3476_v21 = vld [vmem:[%s4954_s0 + $0x238] sm:$0xff] }
  0x93   :  { %3349 = vmatmul.msk.bf16.gmra.mxu3 %vm944_vm1, %v3509_v62  ;;  %3316 = vmatmul.msk.bf16.gmra.mxu2 %vm944_vm1, %v3476_v21 }
  0x96   :  { %v3725_v0 = vpop.f32.mrf.mxu3 }
  0x97   :  { %v1344_v22 = vpop.f32.mrf.mxu0 }
  0x98   :  { %v1345_v23 = vadd.f32 %v3654_v20, %v1344_v22  ;;  %v3451_v22 = vld [vmem:[%s4954_s0 + $0x170] sm:$0xff] }
  0x99   :  { %3291 = vmatmul.msk.bf16.gmra.mxu1 %vm944_vm1, %v3451_v22 }
  0x9a   :  { %v1983_v25 = vmax.f32 %v1345_v23, 0.0 }
  0x9c   :  { %v3659_v26 = vpack.c.bf16 %v1983_v25, %v1982_v24 }
  0x9e   :  { %v3731_v3 = vpop.f32.mrf.mxu3 }
  0x9f   :  { %v1347_v29 = vpop.f32.mrf.mxu0  ;;  %4960 = vst [vmem:[#allocation2_spill] sm:$0xff] %v3731_v3 }
  0xa0   :  { %v1348_v30 = vadd.f32 %v3654_v20, %v1347_v29 }
  0xa2   :  { %3254 = vmatmul.msk.bf16.gmra.mxu0 %vm944_vm1, %v3414_v27  ;;  %v1984_v33 = vmax.f32 %v1348_v30, 0.0 }
  0xa3   :  { %3350 = vmatmul.msk.bf16.gmra.mxu3 %vm944_vm1, %v3510_v5 }
  0xa6   :  { %v3741_v7 = vpop.f32.mrf.mxu3 }
  0xa7   :  { %v1349_v31 = vpop.f32.mrf.mxu0 }
  0xa8   :  { %v1350_v32 = vadd.f32 %v3654_v20, %v1349_v31 }
  0xa9   :  { %3292 = vmatmul.msk.bf16.gmra.mxu1 %vm944_vm1, %v3452_v52 }
  0xaa   :  { %v1985_v34 = vmax.f32 %v1350_v32, 0.0 }
  0xac   :  { %v3671_v35 = vpack.c.bf16 %v1985_v34, %v1984_v33  ;;  %v3421_v33 = vld [vmem:[%s4954_s0 + $0x80] sm:$0xff]  ;;  %v3512_v34 = vld [vmem:[%s4954_s0 + $0x358] sm:$0xff] }
  0xae   :  { %v3751_v11 = vpop.f32.mrf.mxu3 }
  0xaf   :  { %v1352_v38 = vpop.f32.mrf.mxu0 }
  0xb0   :  { %v1353_v39 = vadd.f32 %v3654_v20, %v1352_v38 }
  0xb2   :  { %3255 = vmatmul.msk.bf16.gmra.mxu0 %vm944_vm1, %v3415_v36  ;;  %v1986_v43 = vmax.f32 %v1353_v39, 0.0 }
  0xb3   :  { %3351 = vmatmul.msk.bf16.gmra.mxu3 %vm944_vm1, %v3511_v13 }
  0xb6   :  { %v3761_v15 = vpop.f32.mrf.mxu3 }
  0xb7   :  { %v1354_v40 = vpop.f32.mrf.mxu0 }
  0xb8   :  { %v1355_v41 = vadd.f32 %v3654_v20, %v1354_v40 }
  0xb9   :  { %3293 = vmatmul.msk.bf16.gmra.mxu1 %vm944_vm1, %v3453_v2 }
  0xba   :  { %v1987_v44 = vmax.f32 %v1355_v41, 0.0 }
  0xbc   :  { %v3687_v45 = vpack.c.bf16 %v1987_v44, %v1986_v43 }
  0xbe   :  { %v3775_v27 = vpop.f32.mrf.mxu3 }
  0xbf   :  { %v1357_v48 = vpop.f32.mrf.mxu0 }
  0xc0   :  { %v1358_v49 = vadd.f32 %v3654_v20, %v1357_v48 }
  0xc2   :  { %3256 = vmatmul.msk.bf16.gmra.mxu0 %vm944_vm1, %v3416_v46  ;;  %v1988_v53 = vmax.f32 %v1358_v49, 0.0 }
  0xc3   :  { %3352 = vmatmul.msk.bf16.gmra.mxu3 %vm944_vm1, %v3512_v34 }
  0xc6   :  { %v3789_v42 = vpop.f32.mrf.mxu3 }
  0xc7   :  { %v1359_v50 = vpop.f32.mrf.mxu0 }
  0xc8   :  { %v1360_v51 = vadd.f32 %v3654_v20, %v1359_v50 }
  0xca   :  { %v1989_v54 = vmax.f32 %v1360_v51, 0.0  ;;  %v3477_v51 = vld [vmem:[%s4954_s0 + $0x240] sm:$0xff] }
  0xcb   :  { %3317 = vmatmul.msk.bf16.gmra.mxu2 %vm944_vm1, %v3477_v51 }
  0xcc   :  { %v3703_v55 = vpack.c.bf16 %v1989_v54, %v1988_v53 }
  0xcf   :  { %v1362_v58 = vpop.f32.mrf.mxu0 }
  0xd0   :  { %v1363_v40 = vadd.f32 %v3654_v20, %v1362_v58  ;;  %v3422_v58 = vld [vmem:[%s4954_s0 + $0x88] sm:$0xff] }
  0xd2   :  { %3257 = vmatmul.msk.bf16.gmra.mxu0 %vm944_vm1, %v3417_v56  ;;  %v1990_v46 = vmax.f32 %v1363_v40, 0.0  ;;  %v3801_v56 = vpop.f32.mrf.mxu3  ;;  %v3455_v40 = vld [vmem:[%s4954_s0 + $0x190] sm:$0xff] }
  0xd7   :  { %v1364_v59 = vpop.f32.mrf.mxu0 }
  0xd8   :  { %v1365_v37 = vadd.f32 %v3654_v20, %v1364_v59  ;;  %v3513_v59 = vld [vmem:[%s4954_s0 + $0x360] sm:$0xff] }
  0xd9   :  { %3353 = vmatmul.msk.bf16.gmra.mxu3 %vm944_vm1, %v3513_v59 }
  0xda   :  { %v1991_v43 = vmax.f32 %v1365_v37, 0.0 }
  0xdc   :  { %v2250_v50 = vpack.c.bf16 %v1991_v43, %v1990_v46 }
  0xdf   :  { %v1367_v63 = vpop.f32.mrf.mxu0 }
  0xe0   :  { %v1368_v31 = vadd.f32 %v3654_v20, %v1367_v63 }
  0xe2   :  { %3258 = vmatmul.msk.bf16.gmra.mxu0 %vm944_vm1, %v3418_v61  ;;  %v1992_v41 = vmax.f32 %v1368_v31, 0.0  ;;  %v3815_v61 = vpop.f32.mrf.mxu3 }
  0xe7   :  { %v1369_v1 = vpop.f32.mrf.mxu0 }
  0xe8   :  { %v1370_v28 = vadd.f32 %v3654_v20, %v1369_v1  ;;  %v3478_v1 = vld [vmem:[%s4954_s0 + $0x248] sm:$0xff] }
  0xe9   :  { %3318 = vmatmul.msk.bf16.gmra.mxu2 %vm944_vm1, %v3478_v1 }
  0xea   :  { %v1993_v38 = vmax.f32 %v1370_v28, 0.0 }
  0xec   :  { %v2251_v44 = vpack.c.bf16 %v1993_v38, %v1992_v41 }
  0xef   :  { %v1372_v6 = vpop.f32.mrf.mxu0 }
  0xf0   :  { %v1373_v23 = vadd.f32 %v3654_v20, %v1372_v6  ;;  %v3423_v6 = vld [vmem:[%s4954_s0 + $0x90] sm:$0xff] }
  0xf2   :  { %3259 = vmatmul.msk.bf16.gmra.mxu0 %vm944_vm1, %v3419_v4  ;;  %v1994_v32 = vmax.f32 %v1373_v23, 0.0  ;;  %v3424_v23 = vld [vmem:[%s4954_s0 + $0x98] sm:$0xff] }
  0xf7   :  { %v1374_v8 = vpop.f32.mrf.mxu0 }
  0xf8   :  { %v1375_v18 = vadd.f32 %v3654_v20, %v1374_v8  ;;  %v3514_v8 = vld [vmem:[%s4954_s0 + $0x368] sm:$0xff] }
  0xf9   :  { %3354 = vmatmul.msk.bf16.gmra.mxu3 %vm944_vm1, %v3514_v8 }
  0xfa   :  { %v1995_v29 = vmax.f32 %v1375_v18, 0.0 }
  0xfc   :  { %v2252_v39 = vpack.c.bf16 %v1995_v29, %v1994_v32 }
  0xff   :  { %v1377_v14 = vpop.f32.mrf.mxu0 }
 0x100   :  { %v1378_v16 = vadd.f32 %v3654_v20, %v1377_v14  ;;  %v1547_v14 = vpop.f32.mrf.mxu1 }
 0x101   :  { %v1548_v29 = vadd.f32 %v3654_v20, %v1547_v14 }
 0x102   :  { %3260 = vmatmul.msk.bf16.gmra.mxu0 %vm944_vm1, %v3420_v12  ;;  %v1996_v24 = vmax.f32 %v1378_v16, 0.0  ;;  %v3479_v16 = vld [vmem:[%s4954_s0 + $0x250] sm:$0xff] }
 0x103   :  { %3319 = vmatmul.msk.bf16.gmra.mxu2 %vm944_vm1, %v3479_v16  ;;  %v2064_v34 = vmax.f32 %v1548_v29, 0.0 }
 0x107   :  { %v1379_v17 = vpop.f32.mrf.mxu0 }
 0x108   :  { %v1380_v19 = vadd.f32 %v3654_v20, %v1379_v17  ;;  %v3454_v17 = vld [vmem:[%s4954_s0 + $0x188] sm:$0xff]  ;;  %v1549_v28 = vpop.f32.mrf.mxu1 }
 0x109   :  { %3294 = vmatmul.msk.bf16.gmra.mxu1 %vm944_vm1, %v3454_v17 }
 0x10a   :  { %v1997_v25 = vmax.f32 %v1380_v19, 0.0 }
 0x10c   :  { %v2253_v30 = vpack.c.bf16 %v1997_v25, %v1996_v24  ;;  %v3515_v24 = vld [vmem:[%s4954_s0 + $0x370] sm:$0xff] }
 0x10d   :  { %3355 = vmatmul.msk.bf16.gmra.mxu3 %vm944_vm1, %v3515_v24 }
 0x10e   :  { %2430 = vmatpush.bf16.msrb.mxu1 %v2253_v30  ;;  %v1550_v30 = vadd.f32 %v3654_v20, %v1549_v28  ;;  %v3518_v28 = vld [vmem:[%s4954_s0 + $0x388] sm:$0xff] }
 0x10f   :  { %v1382_v36 = vpop.f32.mrf.mxu0 }
 0x110   :  { %v1383_v47 = vadd.f32 %v3654_v20, %v1382_v36  ;;  %v2065_v36 = vmax.f32 %v1550_v30, 0.0  ;;  %v1552_v38 = vpop.f32.mrf.mxu1 }
 0x111   :  { %v1553_v52 = vadd.f32 %v3654_v20, %v1552_v38 }
 0x112   :  { %3261 = vmatmul.msk.bf16.gmra.mxu0 %vm944_vm1, %v3421_v33  ;;  %2431 = vmatpush.bf16.msrb.mxu1 %v2252_v39  ;;  %v1998_v53 = vmax.f32 %v1383_v47, 0.0  ;;  %v3480_v39 = vld [vmem:[%s4954_s0 + $0x258] sm:$0xff]  ;;  %v3881_v46 = vpack.c.bf16 %v2065_v36, %v2064_v34 }
 0x113   :  { %3320 = vmatmul.msk.bf16.gmra.mxu2 %vm944_vm1, %v3480_v39  ;;  %v2066_v59 = vmax.f32 %v1553_v52, 0.0  ;;  %v3519_v52 = vld [vmem:[%s4954_s0 + $0x390] sm:$0xff] }
 0x116   :  { %2432 = vmatpush.bf16.msrb.mxu1 %v2251_v44 }
 0x117   :  { %v1384_v48 = vpop.f32.mrf.mxu0 }
 0x118   :  { %v1385_v49 = vadd.f32 %v3654_v20, %v1384_v48  ;;  %v3425_v48 = vld [vmem:[%s4954_s0 + $0xa0] sm:$0xff]  ;;  %v1554_v51 = vpop.f32.mrf.mxu1 }
 0x119   :  { %3295 = vmatmul.msk.bf16.gmra.mxu1 %vm944_vm1, %v3455_v40  ;;  %v3483_v40 = vld [vmem:[%s4954_s0 + $0x270] sm:$0xff] }
 0x11a   :  { %v1999_v54 = vmax.f32 %v1385_v49, 0.0  ;;  %2433 = vmatpush.bf16.msrb.mxu1 %v2250_v50  ;;  %v3516_v49 = vld [vmem:[%s4954_s0 + $0x378] sm:$0xff] }
 0x11c   :  { %v3803_v57 = vpack.c.bf16 %v1999_v54, %v1998_v53  ;;  %v1555_v53 = vadd.f32 %v3654_v20, %v1554_v51  ;;  %v3428_v51 = vld [vmem:[%s4954_s0 + $0xb8] sm:$0xff] }
 0x11d   :  { %3356 = vmatmul.msk.bf16.gmra.mxu3 %vm944_vm1, %v3516_v49  ;;  %v1692_v49 = vpop.f32.mrf.mxu2 }
 0x11e   :  { %2434 = vmatpush.bf16.msrb.mxu1 %v3703_v55 }
 0x11f   :  { %v1387_v60 = vpop.f32.mrf.mxu0 }
 0x120   :  { %v1388_v62 = vadd.f32 %v3654_v20, %v1387_v60  ;;  %v2067_v60 = vmax.f32 %v1555_v53, 0.0 }
 0x122   :  { %3262 = vmatmul.msk.bf16.gmra.mxu0 %vm944_vm1, %v3422_v58  ;;  %2435 = vmatpush.bf16.msrb.mxu1 %v3687_v45  ;;  %v2000_v4 = vmax.f32 %v1388_v62, 0.0  ;;  %v1557_v62 = vpop.f32.mrf.mxu1  ;;  %v3911_v2 = vpack.c.bf16 %v2067_v60, %v2066_v59 }
 0x126   :  { %2436 = vmatpush.bf16.msrb.mxu1 %v3671_v35  ;;  %v3829_v35 = vpop.f32.mrf.mxu3 }
 0x127   :  { %v1389_v55 = vpop.f32.mrf.mxu0 }
 0x128   :  { %v1390_v63 = vadd.f32 %v3654_v20, %v1389_v55  ;;  %v3481_v55 = vld [vmem:[%s4954_s0 + $0x260] sm:$0xff] }
 0x129   :  { %3321 = vmatmul.msk.bf16.gmra.mxu2 %vm944_vm1, %v3481_v55 }
 0x12a   :  { %v2001_v5 = vmax.f32 %v1390_v63, 0.0  ;;  %2437 = vmatpush.bf16.msrb.mxu1 %v3659_v26  ;;  %v3456_v63 = vld [vmem:[%s4954_s0 + $0x198] sm:$0xff]  ;;  %v1559_v8 = vpop.f32.mrf.mxu1 }
 0x12b   :  { %3296 = vmatmul.msk.bf16.gmra.mxu1 %vm944_vm1, %v3456_v63  ;;  %v1694_v63 = vpop.f32.mrf.mxu2 }
 0x12c   :  { %v3831_v45 = vpack.c.bf16 %v2001_v5, %v2000_v4  ;;  %v3426_v4 = vld [vmem:[%s4954_s0 + $0xa8] sm:$0xff]  ;;  %v3517_v5 = vld [vmem:[%s4954_s0 + $0x380] sm:$0xff] }
 0x12d   :  { %3357 = vmatmul.msk.bf16.gmra.mxu3 %vm944_vm1, %v3517_v5 }
 0x12e   :  { %v3841_v26 = vpop.f32.mrf.mxu3 }
 0x12f   :  { %v1392_v9 = vpop.f32.mrf.mxu0 }
 0x130   :  { %v1393_v10 = vadd.f32 %v3654_v20, %v1392_v9  ;;  %v1558_v9 = vadd.f32 %v3654_v20, %v1557_v62 }
 0x132   :  { %3263 = vmatmul.msk.bf16.gmra.mxu0 %vm944_vm1, %v3423_v6  ;;  %v2002_v18 = vmax.f32 %v1393_v10, 0.0  ;;  %v1560_v10 = vadd.f32 %v3654_v20, %v1559_v8  ;;  %v2068_v14 = vmax.f32 %v1558_v9, 0.0  ;;  %v1562_v17 = vpop.f32.mrf.mxu1 }
 0x134   :  { %v2069_v16 = vmax.f32 %v1560_v10, 0.0 }
 0x136   :  { %v3853_v21 = vpop.f32.mrf.mxu3  ;;  %v3937_v24 = vpack.c.bf16 %v2069_v16, %v2068_v14  ;;  %v1693_v16 = vadd.f32 %v3654_v20, %v1692_v49  ;;  %v1697_v49 = vpop.f32.mrf.mxu2 }
 0x137   :  { %v1394_v12 = vpop.f32.mrf.mxu0 }
 0x138   :  { %v1395_v13 = vadd.f32 %v3654_v20, %v1394_v12 }
 0x13a   :  { %v2003_v19 = vmax.f32 %v1395_v13, 0.0  ;;  %v1564_v30 = vpop.f32.mrf.mxu1 }
 0x13c   :  { %v3855_v22 = vpack.c.bf16 %v2003_v19, %v2002_v18  ;;  %v3482_v18 = vld [vmem:[%s4954_s0 + $0x268] sm:$0xff]  ;;  %v3457_v19 = vld [vmem:[%s4954_s0 + $0x1a0] sm:$0xff] }
 0x13d   :  { %3322 = vmatmul.msk.bf16.gmra.mxu2 %vm944_vm1, %v3482_v18  ;;  %3297 = vmatmul.msk.bf16.gmra.mxu1 %vm944_vm1, %v3457_v19  ;;  %v3484_v19 = vld [vmem:[%s4954_s0 + $0x278] sm:$0xff] }
 0x13e   :  { %v3867_v31 = vpop.f32.mrf.mxu3  ;;  %3358 = vmatmul.msk.bf16.gmra.mxu3 %vm944_vm1, %v3518_v28 }
 0x13f   :  { %v1397_v25 = vpop.f32.mrf.mxu0 }
 0x140   :  { %v1398_v32 = vadd.f32 %v3654_v20, %v1397_v25  ;;  %v3427_v25 = vld [vmem:[%s4954_s0 + $0xb0] sm:$0xff] }
 0x142   :  { %3264 = vmatmul.msk.bf16.gmra.mxu0 %vm944_vm1, %v3424_v23  ;;  %v2004_v41 = vmax.f32 %v1398_v32, 0.0  ;;  %v1563_v32 = vadd.f32 %v3654_v20, %v1562_v17  ;;  %v1567_v39 = vpop.f32.mrf.mxu1  ;;  %v1695_v17 = vadd.f32 %v3654_v20, %v1694_v63 }
 0x143   :  { %v1568_v60 = vadd.f32 %v3654_v20, %v1567_v39 }
 0x145   :  { %v2072_v8 = vmax.f32 %v1568_v60, 0.0 }
 0x146   :  { %v3879_v44 = vpop.f32.mrf.mxu3 }
 0x147   :  { %v1399_v33 = vpop.f32.mrf.mxu0 }
 0x148   :  { %v1400_v37 = vadd.f32 %v3654_v20, %v1399_v33  ;;  %v1565_v33 = vadd.f32 %v3654_v20, %v1564_v30 }
 0x14a   :  { %v2005_v43 = vmax.f32 %v1400_v37, 0.0  ;;  %v2070_v37 = vmax.f32 %v1563_v32, 0.0  ;;  %v2071_v38 = vmax.f32 %v1565_v33, 0.0  ;;  %v1569_v59 = vpop.f32.mrf.mxu1 }
 0x14b   :  { %v1570_v62 = vadd.f32 %v3654_v20, %v1569_v59 }
 0x14c   :  { %v3883_v47 = vpack.c.bf16 %v2005_v43, %v2004_v41  ;;  %v3458_v41 = vld [vmem:[%s4954_s0 + $0x1a8] sm:$0xff]  ;;  %v3959_v43 = vpack.c.bf16 %v2071_v38, %v2070_v37 }
 0x14d   :  { %3323 = vmatmul.msk.bf16.gmra.mxu2 %vm944_vm1, %v3483_v40  ;;  %3298 = vmatmul.msk.bf16.gmra.mxu1 %vm944_vm1, %v3458_v41  ;;  %v2073_v9 = vmax.f32 %v1570_v62, 0.0  ;;  %v2122_v40 = vmax.f32 %v1693_v16, 0.0  ;;  %v2123_v41 = vmax.f32 %v1695_v17, 0.0  ;;  %v1699_v17 = vpop.f32.mrf.mxu2 }
 0x14e   :  { %v3897_v54 = vpop.f32.mrf.mxu3  ;;  %3359 = vmatmul.msk.bf16.gmra.mxu3 %vm944_vm1, %v3519_v52  ;;  %v3520_v52 = vld [vmem:[%s4954_s0 + $0x398] sm:$0xff] }
 0x14f   :  { %v3891_v50 = vpop.f32.mrf.mxu0 }
 0x152   :  { %3265 = vmatmul.msk.bf16.gmra.mxu0 %vm944_vm1, %v3425_v48  ;;  %v1572_v18 = vpop.f32.mrf.mxu1 }
 0x156   :  { %v3909_v1 = vpop.f32.mrf.mxu3 }
 0x157   :  { %v3899_v58 = vpop.f32.mrf.mxu0 }
 0x158   :  { %v1405_v59 = vadd.f32 %v3654_v20, %v3899_v58 }
 0x15a   :  { %v1574_v63 = vpop.f32.mrf.mxu1 }
 0x15b   :  { %v1575_v58 = vadd.f32 %v3654_v20, %v1574_v63 }
 0x15d   :  { %3324 = vmatmul.msk.bf16.gmra.mxu2 %vm944_vm1, %v3484_v19 }
 0x15e   :  { %v3925_v12 = vpop.f32.mrf.mxu3  ;;  %3360 = vmatmul.msk.bf16.gmra.mxu3 %vm944_vm1, %v3520_v52 }
 0x15f   :  { %v3919_v6 = vpop.f32.mrf.mxu0  ;;  %4961 = vst [vmem:[#allocation3_spill] sm:$0xff] %v3925_v12 }
 0x162   :  { %3266 = vmatmul.msk.bf16.gmra.mxu0 %vm944_vm1, %v3426_v4 }
 0x166   :  { %v3935_v23 = vpop.f32.mrf.mxu3 }
 0x167   :  { %v1409_v13 = vpop.f32.mrf.mxu0  ;;  %4962 = vst [vmem:[#allocation4_spill] sm:$0xff] %v3935_v23 }
 0x168   :  { %v1410_v33 = vadd.f32 %v3654_v20, %v1409_v13  ;;  %v3429_v13 = vld [vmem:[%s4954_s0 + $0xc0] sm:$0xff] }
 0x16a   :  { %v2009_v60 = vmax.f32 %v1410_v33, 0.0  ;;  %v2075_v33 = vmax.f32 %v1575_v58, 0.0 }
 0x16e   :  { %v3949_v34 = vpop.f32.mrf.mxu3 }
 0x16f   :  { %v1412_v29 = vpop.f32.mrf.mxu0  ;;  %4963 = vst [vmem:[#allocation5_spill] sm:$0xff] %v3949_v34 }
 0x170   :  { %v1413_v28 = vadd.f32 %v3654_v20, %v1412_v29  ;;  %v1408_v29 = vadd.f32 %v3654_v20, %v3919_v6  ;;  %v4005_v6 = vpack.c.bf16 %v2123_v41, %v2122_v40  ;;  %v1577_v40 = vpop.f32.mrf.mxu1  ;;  %v3485_v41 = vld [vmem:[%s4954_s0 + $0x280] sm:$0xff] }
 0x171   :  { %3325 = vmatmul.msk.bf16.gmra.mxu2 %vm944_vm1, %v3485_v41  ;;  %v1578_v63 = vadd.f32 %v3654_v20, %v1577_v40 }
 0x172   :  { %3267 = vmatmul.msk.bf16.gmra.mxu0 %vm944_vm1, %v3427_v25  ;;  %v3459_v25 = vld [vmem:[%s4954_s0 + $0x1b0] sm:$0xff]  ;;  %4967 = vst [vmem:[#allocation9_spill] sm:$0xff] %v4005_v6 }
 0x173   :  { %3299 = vmatmul.msk.bf16.gmra.mxu1 %vm944_vm1, %v3459_v25 }
 0x176   :  { %v3961_v48 = vpop.f32.mrf.mxu3 }
 0x177   :  { %v1414_v36 = vpop.f32.mrf.mxu0  ;;  %4964 = vst [vmem:[#allocation6_spill] sm:$0xff] %v3961_v48 }
 0x178   :  { %v1415_v10 = vadd.f32 %v3654_v20, %v1414_v36  ;;  %v3990_v36 = vpack.c.bf16 %v2073_v9, %v2072_v8  ;;  %v1698_v8 = vadd.f32 %v3654_v20, %v1697_v49  ;;  %v1573_v9 = vadd.f32 %v3654_v20, %v1572_v18  ;;  %v3460_v49 = vld [vmem:[%s4954_s0 + $0x1b8] sm:$0xff] }
 0x17a   :  { %v2011_v38 = vmax.f32 %v1415_v10, 0.0 }
 0x17e   :  { %v3973_v55 = vpop.f32.mrf.mxu3 }
 0x17f   :  { %v1417_v53 = vpop.f32.mrf.mxu0  ;;  %4965 = vst [vmem:[#allocation7_spill] sm:$0xff] %v3973_v55 }
 0x180   :  { %v1418_v4 = vadd.f32 %v3654_v20, %v1417_v53 }
 0x182   :  { %3268 = vmatmul.msk.bf16.gmra.mxu0 %vm944_vm1, %v3428_v51  ;;  %v2012_v30 = vmax.f32 %v1418_v4, 0.0  ;;  %v2010_v51 = vmax.f32 %v1413_v28, 0.0  ;;  %v1403_v4 = vadd.f32 %v3654_v20, %v3891_v50  ;;  %v2124_v50 = vmax.f32 %v1698_v8, 0.0  ;;  %v1579_v8 = vpop.f32.mrf.mxu1 }
 0x183   :  { %v1700_v28 = vadd.f32 %v3654_v20, %v1699_v17  ;;  %3300 = vmatmul.msk.bf16.gmra.mxu1 %vm944_vm1, %v3460_v49 }
 0x184   :  { %v2260_v62 = vpack.c.bf16 %v2011_v38, %v2010_v51  ;;  %v2006_v19 = vmax.f32 %v1403_v4, 0.0  ;;  %v3521_v4 = vld [vmem:[%s4954_s0 + $0x3a0] sm:$0xff] }
 0x185   :  { %3361 = vmatmul.msk.bf16.gmra.mxu3 %vm944_vm1, %v3521_v4 }
 0x186   :  { %v3992_v37 = vpop.f32.mrf.mxu3 }
 0x187   :  { %v1419_v5 = vpop.f32.mrf.mxu0  ;;  %4966 = vst [vmem:[#allocation8_spill] sm:$0xff] %v3992_v37 }
 0x188   :  { %v1420_v14 = vadd.f32 %v3654_v20, %v1419_v5  ;;  %v2008_v5 = vmax.f32 %v1408_v29, 0.0 }
 0x18a   :  { %v2013_v32 = vmax.f32 %v1420_v14, 0.0  ;;  %v2007_v14 = vmax.f32 %v1405_v59, 0.0  ;;  %v2259_v16 = vpack.c.bf16 %v2009_v60, %v2008_v5  ;;  %v1702_v60 = vpop.f32.mrf.mxu2 }
 0x18c   :  { %v2261_v39 = vpack.c.bf16 %v2013_v32, %v2012_v30  ;;  %v2074_v32 = vmax.f32 %v1573_v9, 0.0  ;;  %v2258_v18 = vpack.c.bf16 %v2007_v14, %v2006_v19  ;;  %v2076_v9 = vmax.f32 %v1578_v63, 0.0 }
 0x18e   :  { %2443 = vmatpush.bf16.msrb.mxu2 %v2261_v39  ;;  %v4013_v10 = vpop.f32.mrf.mxu3  ;;  %v2125_v39 = vmax.f32 %v1700_v28, 0.0  ;;  %v4028_v52 = vpack.c.bf16 %v2075_v33, %v2074_v32  ;;  %v1703_v28 = vadd.f32 %v3654_v20, %v1702_v60  ;;  %v3486_v32 = vld [vmem:[%s4954_s0 + $0x288] sm:$0xff]  ;;  %v3461_v33 = vld [vmem:[%s4954_s0 + $0x1c0] sm:$0xff] }
 0x18f   :  { %v1422_v53 = vpop.f32.mrf.mxu0  ;;  %4968 = vst [vmem:[#allocation10_spill] sm:$0xff] %v4013_v10  ;;  %3326 = vmatmul.msk.bf16.gmra.mxu2 %vm944_vm1, %v3486_v32 }
 0x190   :  { %v1423_v25 = vadd.f32 %v3654_v20, %v1422_v53 }
 0x192   :  { %3269 = vmatmul.msk.bf16.gmra.mxu0 %vm944_vm1, %v3429_v13  ;;  %2444 = vmatpush.bf16.msrb.mxu2 %v2260_v62  ;;  %v2014_v29 = vmax.f32 %v1423_v25, 0.0  ;;  %v4024_v13 = vpack.c.bf16 %v2125_v39, %v2124_v50  ;;  %v3430_v62 = vld [vmem:[%s4954_s0 + $0xc8] sm:$0xff]  ;;  %v2126_v39 = vmax.f32 %v1703_v28, 0.0 }
 0x193   :  { %3301 = vmatmul.msk.bf16.gmra.mxu1 %vm944_vm1, %v3461_v33 }
 0x194   :  { %4969 = vst [vmem:[#allocation11_spill] sm:$0xff] %v4024_v13 }
 0x196   :  { %2445 = vmatpush.bf16.msrb.mxu2 %v2259_v16  ;;  %v4030_v53 = vpop.f32.mrf.mxu3  ;;  %v1704_v16 = vpop.f32.mrf.mxu2 }
 0x197   :  { %v1424_v30 = vpop.f32.mrf.mxu0  ;;  %4970 = vst [vmem:[#allocation12_spill] sm:$0xff] %v4030_v53 }
 0x198   :  { %v1425_v38 = vadd.f32 %v3654_v20, %v1424_v30  ;;  %v1582_v30 = vpop.f32.mrf.mxu1 }
 0x199   :  { %v1583_v63 = vadd.f32 %v3654_v20, %v1582_v30  ;;  %v3462_v30 = vld [vmem:[%s4954_s0 + $0x1c8] sm:$0xff] }
 0x19a   :  { %v2015_v51 = vmax.f32 %v1425_v38, 0.0  ;;  %2446 = vmatpush.bf16.msrb.mxu2 %v2258_v18 }
 0x19c   :  { %v4032_v59 = vpack.c.bf16 %v2015_v51, %v2014_v29  ;;  %v3431_v29 = vld [vmem:[%s4954_s0 + $0xd0] sm:$0xff]  ;;  %v3522_v51 = vld [vmem:[%s4954_s0 + $0x3a8] sm:$0xff] }
 0x19d   :  { %3362 = vmatmul.msk.bf16.gmra.mxu3 %vm944_vm1, %v3522_v51  ;;  %v3432_v51 = vld [vmem:[%s4954_s0 + $0xd8] sm:$0xff] }
 0x19e   :  { %2447 = vmatpush.bf16.msrb.mxu2 %v3883_v47  ;;  %v1580_v47 = vadd.f32 %v3654_v20, %v1579_v8  ;;  %v4046_v58 = vpop.f32.mrf.mxu3  ;;  %v1707_v49 = vpop.f32.mrf.mxu2 }
 0x19f   :  { %v1427_v5 = vpop.f32.mrf.mxu0  ;;  %4971 = vst [vmem:[#allocation13_spill] sm:$0xff] %v4046_v58 }
 0x1a0   :  { %v2077_v14 = vmax.f32 %v1580_v47, 0.0  ;;  %v1428_v17 = vadd.f32 %v3654_v20, %v1427_v5  ;;  %v1584_v60 = vpop.f32.mrf.mxu1 }
 0x1a1   :  { %v1585_v4 = vadd.f32 %v3654_v20, %v1584_v60 }
 0x1a2   :  { %3270 = vmatmul.msk.bf16.gmra.mxu0 %vm944_vm1, %v3430_v62  ;;  %2448 = vmatpush.bf16.msrb.mxu2 %v3855_v22  ;;  %v4050_v19 = vpack.c.bf16 %v2077_v14, %v2076_v9  ;;  %v1705_v22 = vadd.f32 %v3654_v20, %v1704_v16  ;;  %v2016_v38 = vmax.f32 %v1428_v17, 0.0  ;;  %v2078_v14 = vmax.f32 %v1583_v63, 0.0 }
 0x1a3   :  { %v2079_v16 = vmax.f32 %v1585_v4, 0.0  ;;  %3302 = vmatmul.msk.bf16.gmra.mxu1 %vm944_vm1, %v3462_v30 }
 0x1a4   :  { %v2127_v40 = vmax.f32 %v1705_v22, 0.0  ;;  %v3487_v22 = vld [vmem:[%s4954_s0 + $0x290] sm:$0xff] }
 0x1a5   :  { %3327 = vmatmul.msk.bf16.gmra.mxu2 %vm944_vm1, %v3487_v22 }
 0x1a6   :  { %2449 = vmatpush.bf16.msrb.mxu2 %v3831_v45  ;;  %v4064_v18 = vpop.f32.mrf.mxu3  ;;  %v4075_v62 = vpack.c.bf16 %v2127_v40, %v2126_v39  ;;  %v1709_v8 = vpop.f32.mrf.mxu2 }
 0x1a7   :  { %v1429_v25 = vpop.f32.mrf.mxu0  ;;  %4972 = vst [vmem:[#allocation14_spill] sm:$0xff] %v4064_v18 }
 0x1a8   :  { %v1430_v50 = vadd.f32 %v3654_v20, %v1429_v25  ;;  %v1708_v25 = vadd.f32 %v3654_v20, %v1707_v49  ;;  %v1587_v28 = vpop.f32.mrf.mxu1 }
 0x1aa   :  { %v2017_v45 = vmax.f32 %v1430_v50, 0.0  ;;  %2450 = vmatpush.bf16.msrb.mxu2 %v3803_v57  ;;  %v1710_v50 = vadd.f32 %v3654_v20, %v1709_v8  ;;  %v2128_v39 = vmax.f32 %v1708_v25, 0.0  ;;  %v1588_v8 = vadd.f32 %v3654_v20, %v1587_v28  ;;  %v3488_v28 = vld [vmem:[%s4954_s0 + $0x298] sm:$0xff] }
 0x1ac   :  { %v4066_v41 = vpack.c.bf16 %v2017_v45, %v2016_v38  ;;  %v4096_v45 = vpack.c.bf16 %v2079_v16, %v2078_v14  ;;  %v2129_v40 = vmax.f32 %v1710_v50, 0.0  ;;  %v2080_v25 = vmax.f32 %v1588_v8, 0.0 }
 0x1ae   :  { %v4080_v5 = vpop.f32.mrf.mxu3  ;;  %v4107_v4 = vpack.c.bf16 %v2129_v40, %v2128_v39  ;;  %v3463_v39 = vld [vmem:[%s4954_s0 + $0x1d0] sm:$0xff] }
 0x1af   :  { %v1432_v57 = vpop.f32.mrf.mxu0  ;;  %4973 = vst [vmem:[#allocation15_spill] sm:$0xff] %v4080_v5 }
 0x1b0   :  { %v1433_v9 = vadd.f32 %v3654_v20, %v1432_v57  ;;  %v3523_v57 = vld [vmem:[%s4954_s0 + $0x3b0] sm:$0xff]  ;;  %v1589_v63 = vpop.f32.mrf.mxu1 }
 0x1b1   :  { %3363 = vmatmul.msk.bf16.gmra.mxu3 %vm944_vm1, %v3523_v57 }
 0x1b2   :  { %3271 = vmatmul.msk.bf16.gmra.mxu0 %vm944_vm1, %v3431_v29  ;;  %v2018_v32 = vmax.f32 %v1433_v9, 0.0  ;;  %v1712_v29 = vpop.f32.mrf.mxu2  ;;  %v1590_v9 = vadd.f32 %v3654_v20, %v1589_v63 }
 0x1b3   :  { %v1713_v30 = vadd.f32 %v3654_v20, %v1712_v29  ;;  %3303 = vmatmul.msk.bf16.gmra.mxu1 %vm944_vm1, %v3463_v39 }
 0x1b4   :  { %v2081_v50 = vmax.f32 %v1590_v9, 0.0 }
 0x1b5   :  { %3328 = vmatmul.msk.bf16.gmra.mxu2 %vm944_vm1, %v3488_v28 }
 0x1b6   :  { %v4094_v38 = vpop.f32.mrf.mxu3  ;;  %v4128_v29 = vpack.c.bf16 %v2081_v50, %v2080_v25 }
 0x1b7   :  { %v1434_v47 = vpop.f32.mrf.mxu0  ;;  %4974 = vst [vmem:[#allocation16_spill] sm:$0xff] %v4094_v38 }
 0x1b8   :  { %v1435_v17 = vadd.f32 %v3654_v20, %v1434_v47 }
 0x1ba   :  { %v2019_v33 = vmax.f32 %v1435_v17, 0.0  ;;  %v1714_v14 = vpop.f32.mrf.mxu2 }
 0x1bc   :  { %v4098_v49 = vpack.c.bf16 %v2019_v33, %v2018_v32  ;;  %v1715_v32 = vadd.f32 %v3654_v20, %v1714_v14  ;;  %v1592_v33 = vpop.f32.mrf.mxu1  ;;  %v3433_v14 = vld [vmem:[%s4954_s0 + $0xe0] sm:$0xff] }
 0x1bd   :  { %v1593_v50 = vadd.f32 %v3654_v20, %v1592_v33  ;;  %v3464_v33 = vld [vmem:[%s4954_s0 + $0x1d8] sm:$0xff] }
 0x1be   :  { %v4112_v47 = vpop.f32.mrf.mxu3  ;;  %v2131_v63 = vmax.f32 %v1715_v32, 0.0 }
 0x1bf   :  { %v1437_v60 = vpop.f32.mrf.mxu0  ;;  %4975 = vst [vmem:[#allocation17_spill] sm:$0xff] %v4112_v47 }
 0x1c0   :  { %v1438_v16 = vadd.f32 %v3654_v20, %v1437_v60  ;;  %v2130_v60 = vmax.f32 %v1713_v30, 0.0 }
 0x1c2   :  { %3272 = vmatmul.msk.bf16.gmra.mxu0 %vm944_vm1, %v3432_v51  ;;  %v2020_v40 = vmax.f32 %v1438_v16, 0.0  ;;  %v1717_v9 = vpop.f32.mrf.mxu2  ;;  %v3524_v16 = vld [vmem:[%s4954_s0 + $0x3b8] sm:$0xff]  ;;  %v4141_v25 = vpack.c.bf16 %v2131_v63, %v2130_v60  ;;  %v3489_v60 = vld [vmem:[%s4954_s0 + $0x2a0] sm:$0xff] }
 0x1c3   :  { %3364 = vmatmul.msk.bf16.gmra.mxu3 %vm944_vm1, %v3524_v16  ;;  %v1718_v23 = vadd.f32 %v3654_v20, %v1717_v9  ;;  %3304 = vmatmul.msk.bf16.gmra.mxu1 %vm944_vm1, %v3464_v33 }
 0x1c5   :  { %3329 = vmatmul.msk.bf16.gmra.mxu2 %vm944_vm1, %v3489_v60  ;;  %v2132_v9 = vmax.f32 %v1718_v23, 0.0 }
 0x1c6   :  { %v4126_v57 = vpop.f32.mrf.mxu3 }
 0x1c7   :  { %v1439_v17 = vpop.f32.mrf.mxu0  ;;  %4976 = vst [vmem:[#allocation18_spill] sm:$0xff] %v4126_v57 }
 0x1c8   :  { %v1440_v22 = vadd.f32 %v3654_v20, %v1439_v17 }
 0x1ca   :  { %v2021_v51 = vmax.f32 %v1440_v22, 0.0  ;;  %v1594_v22 = vpop.f32.mrf.mxu1  ;;  %v1719_v28 = vpop.f32.mrf.mxu2 }
 0x1cb   :  { %v1595_v30 = vadd.f32 %v3654_v20, %v1594_v22  ;;  %v1720_v12 = vadd.f32 %v3654_v20, %v1719_v28  ;;  %v3525_v28 = vld [vmem:[%s4954_s0 + $0x3c0] sm:$0xff] }
 0x1cc   :  { %v4130_v8 = vpack.c.bf16 %v2021_v51, %v2020_v40  ;;  %v2082_v40 = vmax.f32 %v1593_v50, 0.0 }
 0x1cd   :  { %v2083_v51 = vmax.f32 %v1595_v30, 0.0  ;;  %v2133_v22 = vmax.f32 %v1720_v12, 0.0  ;;  %v3434_v30 = vld [vmem:[%s4954_s0 + $0xe8] sm:$0xff] }
 0x1ce   :  { %v4146_v32 = vpop.f32.mrf.mxu3 }
 0x1cf   :  { %v4138_v17 = vpop.f32.mrf.mxu0  ;;  %4977 = vst [vmem:[#allocation19_spill] sm:$0xff] %v4146_v32  ;;  %v4173_v33 = vpack.c.bf16 %v2133_v22, %v2132_v9  ;;  %v3490_v9 = vld [vmem:[%s4954_s0 + $0x2a8] sm:$0xff] }
 0x1d2   :  { %3273 = vmatmul.msk.bf16.gmra.mxu0 %vm944_vm1, %v3433_v14  ;;  %v1597_v16 = vpop.f32.mrf.mxu1  ;;  %v4162_v14 = vpack.c.bf16 %v2083_v51, %v2082_v40  ;;  %v1722_v50 = vpop.f32.mrf.mxu2 }
 0x1d3   :  { %3365 = vmatmul.msk.bf16.gmra.mxu3 %vm944_vm1, %v3525_v28  ;;  %v1598_v12 = vadd.f32 %v3654_v20, %v1597_v16  ;;  %v1723_v53 = vadd.f32 %v3654_v20, %v1722_v50  ;;  %v3465_v16 = vld [vmem:[%s4954_s0 + $0x1e0] sm:$0xff] }
 0x1d4   :  { %3305 = vmatmul.msk.bf16.gmra.mxu1 %vm944_vm1, %v3465_v16 }
 0x1d5   :  { %v2084_v37 = vmax.f32 %v1598_v12, 0.0  ;;  %3330 = vmatmul.msk.bf16.gmra.mxu2 %vm944_vm1, %v3490_v9  ;;  %v2134_v50 = vmax.f32 %v1723_v53, 0.0 }
 0x1d6   :  { %v4160_v63 = vpop.f32.mrf.mxu3 }
 0x1d7   :  { %v4148_v39 = vpop.f32.mrf.mxu0  ;;  %4978 = vst [vmem:[#allocation20_spill] sm:$0xff] %v4160_v63 }
 0x1da   :  { %v1599_v60 = vpop.f32.mrf.mxu1  ;;  %v1724_v51 = vpop.f32.mrf.mxu2 }
 0x1db   :  { %v1600_v23 = vadd.f32 %v3654_v20, %v1599_v60  ;;  %v1725_v10 = vadd.f32 %v3654_v20, %v1724_v51  ;;  %v3526_v51 = vld [vmem:[%s4954_s0 + $0x3c8] sm:$0xff] }
 0x1dd   :  { %v2085_v55 = vmax.f32 %v1600_v23, 0.0  ;;  %v2135_v60 = vmax.f32 %v1725_v10, 0.0  ;;  %v3435_v23 = vld [vmem:[%s4954_s0 + $0xf0] sm:$0xff] }
 0x1de   :  { %v4178_v40 = vpop.f32.mrf.mxu3 }
 0x1df   :  { %v4170_v48 = vpop.f32.mrf.mxu0  ;;  %4979 = vst [vmem:[#allocation21_spill] sm:$0xff] %v4178_v40  ;;  %v4203_v9 = vpack.c.bf16 %v2135_v60, %v2134_v50  ;;  %v3491_v50 = vld [vmem:[%s4954_s0 + $0x2b0] sm:$0xff] }
 0x1e2   :  { %3274 = vmatmul.msk.bf16.gmra.mxu0 %vm944_vm1, %v3434_v30  ;;  %v1602_v28 = vpop.f32.mrf.mxu1  ;;  %v4194_v30 = vpack.c.bf16 %v2085_v55, %v2084_v37  ;;  %v1727_v12 = vpop.f32.mrf.mxu2 }
 0x1e3   :  { %3366 = vmatmul.msk.bf16.gmra.mxu3 %vm944_vm1, %v3526_v51  ;;  %v1603_v55 = vadd.f32 %v3654_v20, %v1602_v28  ;;  %v1728_v38 = vadd.f32 %v3654_v20, %v1727_v12  ;;  %v3466_v28 = vld [vmem:[%s4954_s0 + $0x1e8] sm:$0xff] }
 0x1e4   :  { %3306 = vmatmul.msk.bf16.gmra.mxu1 %vm944_vm1, %v3466_v28 }
 0x1e5   :  { %3331 = vmatmul.msk.bf16.gmra.mxu2 %vm944_vm1, %v3491_v50  ;;  %v2136_v12 = vmax.f32 %v1728_v38, 0.0 }
 0x1e6   :  { %v4192_v22 = vpop.f32.mrf.mxu3 }
 0x1e7   :  { %v4180_v34 = vpop.f32.mrf.mxu0  ;;  %4980 = vst [vmem:[#allocation22_spill] sm:$0xff] %v4192_v22  ;;  %v2086_v22 = vmax.f32 %v1603_v55, 0.0  ;;  %v3436_v55 = vld [vmem:[%s4954_s0 + $0xf8] sm:$0xff] }
 0x1ea   :  { %v1604_v18 = vpop.f32.mrf.mxu1  ;;  %v1729_v53 = vpop.f32.mrf.mxu2 }
 0x1eb   :  { %v1605_v37 = vadd.f32 %v3654_v20, %v1604_v18  ;;  %v1730_v5 = vadd.f32 %v3654_v20, %v1729_v53 }
 0x1ed   :  { %v2087_v58 = vmax.f32 %v1605_v37, 0.0  ;;  %v3527_v37 = vld [vmem:[%s4954_s0 + $0x3d0] sm:$0xff] }
 0x1ee   :  { %v4208_v10 = vpop.f32.mrf.mxu3 }
 0x1ef   :  { %v1452_v40 = vpop.f32.mrf.mxu0  ;;  %4981 = vst [vmem:[#allocation23_spill] sm:$0xff] %v4208_v10  ;;  %v4220_v18 = vpack.c.bf16 %v2087_v58, %v2086_v22 }
 0x1f2   :  { %3275 = vmatmul.msk.bf16.gmra.mxu0 %vm944_vm1, %v3435_v23  ;;  %v1607_v57 = vpop.f32.mrf.mxu1  ;;  %v2137_v23 = vmax.f32 %v1730_v5, 0.0  ;;  %v1732_v51 = vpop.f32.mrf.mxu2  ;;  %v4238_v5 = vld [vmem:[%s4953_s3] ss:$0 sm:$0xff] }
 0x1f3   :  { %3367 = vmatmul.msk.bf16.gmra.mxu3 %vm944_vm1, %v3527_v37  ;;  %v1608_v58 = vadd.f32 %v3654_v20, %v1607_v57  ;;  %v1733_v20 = vadd.f32 %v4238_v5, %v1732_v51 }
 0x1f4   :  { %v4231_v50 = vpack.c.bf16 %v2137_v23, %v2136_v12 }
 0x1f5   :  { %v2088_v37 = vmax.f32 %v1608_v58, 0.0  ;;  %v1453_v58 = vadd.f32 %v4238_v5, %v1452_v40  ;;  %v2138_v6 = vmax.f32 %v1733_v20, 0.0  ;;  %v1448_v40 = vadd.f32 %v4238_v5, %v4170_v48 }
 0x1f6   :  { %v4222_v60 = vpop.f32.mrf.mxu3  ;;  %v1443_v48 = vadd.f32 %v4238_v5, %v4138_v17 }
 0x1f7   :  { %v1454_v16 = vpop.f32.mrf.mxu0  ;;  %4982 = vst [vmem:[#allocation24_spill] sm:$0xff] %v4222_v60 }
 0x1f8   :  { %v1455_v23 = vadd.f32 %v4238_v5, %v1454_v16 }
 0x1fa   :  { %v1609_v10 = vpop.f32.mrf.mxu1  ;;  %v1734_v28 = vpop.f32.mrf.mxu2 }
 0x1fb   :  { %v1610_v38 = vadd.f32 %v4238_v5, %v1609_v10  ;;  %v1735_v57 = vadd.f32 %v4238_v5, %v1734_v28  ;;  %v3492_v10 = vld [vmem:[%s4954_s0 + $0x2b8] sm:$0xff]  ;;  %v2027_v28 = vmax.f32 %v1455_v23, 0.0 }
 0x1fc   :  { %3332 = vmatmul.msk.bf16.gmra.mxu2 %vm944_vm1, %v3492_v10 }
 0x1fd   :  { %v2089_v12 = vmax.f32 %v1610_v38, 0.0  ;;  %v2139_v13 = vmax.f32 %v1735_v57, 0.0 }
 0x1fe   :  { %v4241_v22 = vpop.f32.mrf.mxu3 }
 0x1ff   :  { %v1457_v53 = vpop.f32.mrf.mxu0  ;;  %4983 = vst [vmem:[#allocation25_spill] sm:$0xff] %v4241_v22  ;;  %v4259_v16 = vpack.c.bf16 %v2089_v12, %v2088_v37  ;;  %v3528_v37 = vld [vmem:[%s4954_s0 + $0x3d8] sm:$0xff]  ;;  %v4273_v57 = vpack.c.bf16 %v2139_v13, %v2138_v6 }
 0x200   :  { %v1458_v60 = vadd.f32 %v4238_v5, %v1457_v53  ;;  %v3467_v53 = vld [vmem:[%s4954_s0 + $0x1f0] sm:$0xff] }
 0x201   :  { %3307 = vmatmul.msk.bf16.gmra.mxu1 %vm944_vm1, %v3467_v53 }
 0x202   :  { %3276 = vmatmul.msk.bf16.gmra.mxu0 %vm944_vm1, %v3436_v55  ;;  %v1612_v63 = vpop.f32.mrf.mxu1  ;;  %v2028_v38 = vmax.f32 %v1458_v60, 0.0  ;;  %v1737_v3 = vpop.f32.mrf.mxu2  ;;  %v2026_v60 = vmax.f32 %v1453_v58, 0.0 }
 0x203   :  { %3368 = vmatmul.msk.bf16.gmra.mxu3 %vm944_vm1, %v3528_v37  ;;  %v1738_v10 = vadd.f32 %v4238_v5, %v1737_v3  ;;  %v1613_v53 = vadd.f32 %v4238_v5, %v1612_v63 }
 0x205   :  { %v2140_v17 = vmax.f32 %v1738_v10, 0.0 }
 0x206   :  { %v4261_v51 = vpop.f32.mrf.mxu3 }
 0x207   :  { %v1459_v47 = vpop.f32.mrf.mxu0  ;;  %4984 = vst [vmem:[#allocation26_spill] sm:$0xff] %v4261_v51 }
 0x208   :  { %v1460_v55 = vadd.f32 %v4238_v5, %v1459_v47  ;;  %v1450_v47 = vadd.f32 %v4238_v5, %v4180_v34  ;;  %v3437_v34 = vld [vmem:[%s4954_s0 + $0x100] sm:$0xff] }
 0x20a   :  { %v2029_v22 = vmax.f32 %v1460_v55, 0.0  ;;  %v2025_v23 = vmax.f32 %v1450_v47, 0.0  ;;  %v2268_v55 = vpack.c.bf16 %v2027_v28, %v2026_v60  ;;  %v1614_v20 = vpop.f32.mrf.mxu1  ;;  %v1739_v13 = vpop.f32.mrf.mxu2  ;;  %v2022_v47 = vmax.f32 %v1443_v48, 0.0 }
 0x20c   :  { %v2269_v32 = vpack.c.bf16 %v2029_v22, %v2028_v38  ;;  %v1445_v22 = vadd.f32 %v4238_v5, %v4148_v39  ;;  %v1615_v39 = vadd.f32 %v4238_v5, %v1614_v20 }
 0x20e   :  { %2456 = vmatpush.bf16.msrb.mxu3 %v2269_v32  ;;  %v2024_v32 = vmax.f32 %v1448_v40, 0.0  ;;  %v4282_v58 = vpop.f32.mrf.mxu3  ;;  %v2023_v38 = vmax.f32 %v1445_v22, 0.0  ;;  %v1740_v40 = vadd.f32 %v4238_v5, %v1739_v13  ;;  %v2091_v37 = vmax.f32 %v1615_v39, 0.0  ;;  %v3493_v22 = vld [vmem:[%s4954_s0 + $0x2c0] sm:$0xff] }
 0x20f   :  { %v1462_v12 = vpop.f32.mrf.mxu0  ;;  %4985 = vst [vmem:[#allocation27_spill] sm:$0xff] %v4282_v58  ;;  %3333 = vmatmul.msk.bf16.gmra.mxu2 %vm944_vm1, %v3493_v22 }
 0x210   :  { %v2267_v6 = vpack.c.bf16 %v2025_v23, %v2024_v32  ;;  %v1463_v28 = vadd.f32 %v4238_v5, %v1462_v12  ;;  %v2266_v63 = vpack.c.bf16 %v2023_v38, %v2022_v47  ;;  %v3468_v12 = vld [vmem:[%s4954_s0 + $0x1f8] sm:$0xff]  ;;  %v3438_v38 = vld [vmem:[%s4954_s0 + $0x108] sm:$0xff]  ;;  %v3529_v47 = vld [vmem:[%s4954_s0 + $0x3e0] sm:$0xff] }
 0x211   :  { %3308 = vmatmul.msk.bf16.gmra.mxu1 %vm944_vm1, %v3468_v12 }
 0x212   :  { %3277 = vmatmul.msk.bf16.gmra.mxu0 %vm944_vm1, %v3437_v34  ;;  %2457 = vmatpush.bf16.msrb.mxu3 %v2268_v55  ;;  %v2090_v34 = vmax.f32 %v1613_v53, 0.0  ;;  %v2141_v55 = vmax.f32 %v1740_v40, 0.0  ;;  %v1617_v20 = vpop.f32.mrf.mxu1  ;;  %v2030_v23 = vmax.f32 %v1463_v28, 0.0  ;;  %v1742_v13 = vpop.f32.mrf.mxu2 }
 0x213   :  { %3369 = vmatmul.msk.bf16.gmra.mxu3 %vm944_vm1, %v3529_v47  ;;  %v1743_v22 = vadd.f32 %v4238_v5, %v1742_v13 }
 0x214   :  { %v4293_v32 = vpack.c.bf16 %v2141_v55, %v2140_v17  ;;  %v4297_v10 = vpack.c.bf16 %v2091_v37, %v2090_v34 }
 0x215   :  { %v2142_v13 = vmax.f32 %v1743_v22, 0.0 }
 0x216   :  { %2458 = vmatpush.bf16.msrb.mxu3 %v2267_v6  ;;  %v4299_v53 = vpop.f32.mrf.mxu3  ;;  %v1618_v6 = vadd.f32 %v4238_v5, %v1617_v20 }
 0x217   :  { %v1464_v60 = vpop.f32.mrf.mxu0  ;;  %4986 = vst [vmem:[#allocation28_spill] sm:$0xff] %v4299_v53 }
 0x218   :  { %v1465_v3 = vadd.f32 %v4238_v5, %v1464_v60 }
 0x21a   :  { %v2031_v48 = vmax.f32 %v1465_v3, 0.0  ;;  %2459 = vmatpush.bf16.msrb.mxu3 %v2266_v63  ;;  %v1619_v17 = vpop.f32.mrf.mxu1  ;;  %v1744_v63 = vpop.f32.mrf.mxu2 }
 0x21b   :  { %v1620_v40 = vadd.f32 %v4238_v5, %v1619_v17  ;;  %v3439_v17 = vld [vmem:[%s4954_s0 + $0x110] sm:$0xff] }
 0x21c   :  { %v4301_v39 = vpack.c.bf16 %v2031_v48, %v2030_v23  ;;  %v3494_v23 = vld [vmem:[%s4954_s0 + $0x2c8] sm:$0xff]  ;;  %v3469_v48 = vld [vmem:[%s4954_s0 + $0x200] sm:$0xff] }
 0x21d   :  { %v2093_v34 = vmax.f32 %v1620_v40, 0.0 }
 0x21e   :  { %2460 = vmatpush.bf16.msrb.mxu3 %v4130_v8  ;;  %v2092_v8 = vmax.f32 %v1618_v6, 0.0  ;;  %v4315_v60 = vpop.f32.mrf.mxu3 }
 0x21f   :  { %v1467_v28 = vpop.f32.mrf.mxu0  ;;  %4987 = vst [vmem:[#allocation29_spill] sm:$0xff] %v4315_v60  ;;  %3334 = vmatmul.msk.bf16.gmra.mxu2 %vm944_vm1, %v3494_v23 }
 0x220   :  { %v1468_v37 = vadd.f32 %v4238_v5, %v1467_v28  ;;  %v4319_v3 = vpack.c.bf16 %v2093_v34, %v2092_v8 }
 0x221   :  { %3309 = vmatmul.msk.bf16.gmra.mxu1 %vm944_vm1, %v3469_v48 }
 0x222   :  { %3278 = vmatmul.msk.bf16.gmra.mxu0 %vm944_vm1, %v3438_v38  ;;  %2461 = vmatpush.bf16.msrb.mxu3 %v4098_v49  ;;  %v1745_v49 = vadd.f32 %v4238_v5, %v1744_v63  ;;  %v1622_v12 = vpop.f32.mrf.mxu1  ;;  %v1747_v8 = vpop.f32.mrf.mxu2 }
 0x224   :  { %v2143_v47 = vmax.f32 %v1745_v49, 0.0 }
 0x226   :  { %2462 = vmatpush.bf16.msrb.mxu3 %v4066_v41  ;;  %v2032_v41 = vmax.f32 %v1468_v37, 0.0  ;;  %v4333_v6 = vpop.f32.mrf.mxu3  ;;  %v4346_v34 = vpack.c.bf16 %v2143_v47, %v2142_v13  ;;  %v1623_v37 = vadd.f32 %v4238_v5, %v1622_v12  ;;  %v3495_v12 = vld [vmem:[%s4954_s0 + $0x2d0] sm:$0xff]  ;;  %v3470_v13 = vld [vmem:[%s4954_s0 + $0x208] sm:$0xff] }
 0x227   :  { %v1469_v55 = vpop.f32.mrf.mxu0  ;;  %4988 = vst [vmem:[#allocation30_spill] sm:$0xff] %v4333_v6 }
 0x228   :  { %v1470_v20 = vadd.f32 %v4238_v5, %v1469_v55  ;;  %4989 = vst [vmem:[#allocation31_spill] sm:$0xff] %v4346_v34 }
 0x22a   :  { %v2033_v38 = vmax.f32 %v1470_v20, 0.0  ;;  %2463 = vmatpush.bf16.msrb.mxu3 %v4032_v59  ;;  %v3530_v59 = vld [vmem:[%s4954_s0 + $0x3e8] sm:$0xff]  ;;  %v1624_v40 = vpop.f32.mrf.mxu1  ;;  %v1749_v22 = vpop.f32.mrf.mxu2 }
 0x22b   :  { %3370 = vmatmul.msk.bf16.gmra.mxu3 %vm944_vm1, %v3530_v59  ;;  %v1625_v63 = vadd.f32 %v4238_v5, %v1624_v40 }
 0x22c   :  { %v4336_v28 = vpack.c.bf16 %v2033_v38, %v2032_v41  ;;  %v1748_v41 = vadd.f32 %v4238_v5, %v1747_v8 }
 0x22d   :  { %v2095_v23 = vmax.f32 %v1625_v63, 0.0 }
 0x22e   :  { %2495 = vmatpush.bf16.msra.mxu3 %v4050_v19  ;;  %v4352_v55 = vpop.f32.mrf.mxu3  ;;  %v2144_v59 = vmax.f32 %v1748_v41, 0.0 }
 0x22f   :  { %v1472_v19 = vpop.f32.mrf.mxu0  ;;  %4990 = vst [vmem:[#allocation32_spill] sm:$0xff] %v4352_v55  ;;  %3335 = vmatmul.msk.bf16.gmra.mxu2 %vm944_vm1, %v3495_v12  ;;  %v3474_v55 = vld [vmem:[%s4954_s0 + $0x228] sm:$0xff] }
 0x230   :  { %v1473_v20 = vadd.f32 %v4238_v5, %v1472_v19 }
 0x231   :  { %3310 = vmatmul.msk.bf16.gmra.mxu1 %vm944_vm1, %v3470_v13 }
 0x232   :  { %2496 = vmatpush.bf16.msra.mxu3 %v4028_v52  ;;  %3279 = vmatmul.msk.bf16.gmra.mxu0 %vm944_vm1, %v3439_v17  ;;  %v2094_v52 = vmax.f32 %v1623_v37, 0.0  ;;  %v1627_v38 = vpop.f32.mrf.mxu1  ;;  %v2034_v47 = vmax.f32 %v1473_v20, 0.0  ;;  %v3440_v37 = vld [vmem:[%s4954_s0 + $0x118] sm:$0xff]  ;;  %v1752_v63 = vpop.f32.mrf.mxu2 }
 0x234   :  { %v4369_v8 = vpack.c.bf16 %v2095_v23, %v2094_v52  ;;  %v1628_v52 = vadd.f32 %v4238_v5, %v1627_v38  ;;  %v3471_v38 = vld [vmem:[%s4954_s0 + $0x210] sm:$0xff] }
 0x236   :  { %2497 = vmatpush.bf16.msra.mxu3 %v3990_v36  ;;  %v1750_v36 = vadd.f32 %v4238_v5, %v1749_v22  ;;  %4992 = vst [vmem:[#allocation34_spill] sm:$0xff] %v4369_v8 }
 0x237   :  { %v1474_v49 = vpop.f32.mrf.mxu0 }
 0x238   :  { %v1475_v48 = vadd.f32 %v4238_v5, %v1474_v49  ;;  %v2145_v19 = vmax.f32 %v1750_v36, 0.0 }
 0x23a   :  { %2498 = vmatpush.bf16.msra.mxu3 %v3959_v43  ;;  %v2035_v17 = vmax.f32 %v1475_v48, 0.0  ;;  %v4367_v43 = vpop.f32.mrf.mxu3  ;;  %v1629_v22 = vpop.f32.mrf.mxu1  ;;  %v4382_v49 = vpack.c.bf16 %v2145_v19, %v2144_v59 }
 0x23b   :  { %4991 = vst [vmem:[#allocation33_spill] sm:$0xff] %v4367_v43  ;;  %v1630_v23 = vadd.f32 %v4238_v5, %v1629_v22  ;;  %v1754_v36 = vpop.f32.mrf.mxu2 }
 0x23c   :  { %v4372_v40 = vpack.c.bf16 %v2035_v17, %v2034_v47  ;;  %4993 = vst [vmem:[#allocation35_spill] sm:$0xff] %v4382_v49  ;;  %v1753_v17 = vadd.f32 %v4238_v5, %v1752_v63  ;;  %v1755_v59 = vadd.f32 %v4238_v5, %v1754_v36  ;;  %v3441_v36 = vld [vmem:[%s4954_s0 + $0x120] sm:$0xff] }
 0x23d   :  { %v2097_v13 = vmax.f32 %v1630_v23, 0.0 }
 0x23e   :  { %2499 = vmatpush.bf16.msra.mxu3 %v3937_v24  ;;  %v3531_v24 = vld [vmem:[%s4954_s0 + $0x3f0] sm:$0xff]  ;;  %v2146_v63 = vmax.f32 %v1753_v17, 0.0 }
 0x23f   :  { %v1477_v20 = vpop.f32.mrf.mxu0  ;;  %3371 = vmatmul.msk.bf16.gmra.mxu3 %vm944_vm1, %v3531_v24 }
 0x240   :  { %v1478_v41 = vadd.f32 %v4238_v5, %v1477_v20 }
 0x241   :  { %3311 = vmatmul.msk.bf16.gmra.mxu1 %vm944_vm1, %v3471_v38 }
 0x242   :  { %2500 = vmatpush.bf16.msra.mxu3 %v3911_v2  ;;  %3280 = vmatmul.msk.bf16.gmra.mxu0 %vm944_vm1, %v3440_v37  ;;  %v4388_v48 = vpop.f32.mrf.mxu3  ;;  %v2096_v2 = vmax.f32 %v1628_v52, 0.0  ;;  %v1632_v19 = vpop.f32.mrf.mxu1  ;;  %v2036_v37 = vmax.f32 %v1478_v41, 0.0  ;;  %v2147_v52 = vmax.f32 %v1755_v59, 0.0  ;;  %v3532_v41 = vld [vmem:[%s4954_s0 + $0x3f8] sm:$0xff] }
 0x243   :  { %4994 = vst [vmem:[#allocation36_spill] sm:$0xff] %v4388_v48 }
 0x244   :  { %v4403_v22 = vpack.c.bf16 %v2097_v13, %v2096_v2  ;;  %v4417_v2 = vpack.c.bf16 %v2147_v52, %v2146_v63  ;;  %v1633_v13 = vadd.f32 %v4238_v5, %v1632_v19  ;;  %v3497_v63 = vld [vmem:[%s4954_s0 + $0x2e0] sm:$0xff]  ;;  %v3472_v19 = vld [vmem:[%s4954_s0 + $0x218] sm:$0xff] }
 0x246   :  { %2501 = vmatpush.bf16.msra.mxu3 %v3881_v46  ;;  %v3496_v46 = vld [vmem:[%s4954_s0 + $0x2d8] sm:$0xff]  ;;  %4996 = vst [vmem:[#allocation38_spill] sm:$0xff] %v4403_v22 }
 0x247   :  { %v1479_v12 = vpop.f32.mrf.mxu0  ;;  %3336 = vmatmul.msk.bf16.gmra.mxu2 %vm944_vm1, %v3496_v46  ;;  %4997 = vst [vmem:[#allocation39_spill] sm:$0xff] %v4417_v2 }
 0x248   :  { %v1480_v47 = vadd.f32 %v4238_v5, %v1479_v12  ;;  %v1757_v12 = vpop.f32.mrf.mxu2 }
 0x249   :  { %v1758_v51 = vadd.f32 %v4238_v5, %v1757_v12 }
 0x24a   :  { %v2037_v24 = vmax.f32 %v1480_v47, 0.0  ;;  %v4401_v20 = vpop.f32.mrf.mxu3  ;;  %v1634_v46 = vpop.f32.mrf.mxu1 }
 0x24b   :  { %4995 = vst [vmem:[#allocation37_spill] sm:$0xff] %v4401_v20  ;;  %v1635_v17 = vadd.f32 %v4238_v5, %v1634_v46  ;;  %v2148_v46 = vmax.f32 %v1758_v51, 0.0 }
 0x24c   :  { %v4406_v23 = vpack.c.bf16 %v2037_v24, %v2036_v37  ;;  %v2098_v24 = vmax.f32 %v1633_v13, 0.0  ;;  %v3442_v13 = vld [vmem:[%s4954_s0 + $0x128] sm:$0xff] }
 0x24d   :  { %v2099_v34 = vmax.f32 %v1635_v17, 0.0 }
 0x24f   :  { %v4414_v47 = vpop.f32.mrf.mxu0  ;;  %3372 = vmatmul.msk.bf16.gmra.mxu3 %vm944_vm1, %v3532_v41 }
 0x250   :  { %v1759_v38 = vpop.f32.mrf.mxu2 }
 0x251   :  { %v1760_v49 = vadd.f32 %v4238_v5, %v1759_v38  ;;  %3312 = vmatmul.msk.bf16.gmra.mxu1 %vm944_vm1, %v3472_v19  ;;  %v3473_v19 = vld [vmem:[%s4954_s0 + $0x220] sm:$0xff] }
 0x252   :  { %3281 = vmatmul.msk.bf16.gmra.mxu0 %vm944_vm1, %v3441_v36  ;;  %v4422_v59 = vpop.f32.mrf.mxu3  ;;  %v4428_v41 = vpop.f32.mrf.mxu1  ;;  %v4439_v36 = vpack.c.bf16 %v2099_v34, %v2098_v24  ;;  %v3498_v24 = vld [vmem:[%s4954_s0 + $0x2e8] sm:$0xff] }
 0x253   :  { %4998 = vst [vmem:[#allocation40_spill] sm:$0xff] %v4422_v59  ;;  %v2149_v12 = vmax.f32 %v1760_v49, 0.0 }
 0x254   :  { %4999 = vst [vmem:[#allocation41_spill] sm:$0xff] %v4428_v41 }
 0x255   :  { %5001 = vst [vmem:[#allocation43_spill] sm:$0xff] %v4439_v36  ;;  %v4449_v58 = vpack.c.bf16 %v2149_v12, %v2148_v46  ;;  %v3443_v12 = vld [vmem:[%s4954_s0 + $0x130] sm:$0xff] }
 0x257   :  { %v4424_v37 = vpop.f32.mrf.mxu0  ;;  %3337 = vmatmul.msk.bf16.gmra.mxu2 %vm944_vm1, %v3497_v63  ;;  %5004 = vst [vmem:[#allocation46_spill] sm:$0xff] %v4449_v58 }
 0x258   :  { %v4445_v17 = vpop.f32.mrf.mxu2 }
 0x259   :  { %5002 = vst [vmem:[#allocation44_spill] sm:$0xff] %v4445_v17 }
 0x25a   :  { %v4437_v52 = vpop.f32.mrf.mxu3  ;;  %v4447_v53 = vpop.f32.mrf.mxu1 }
 0x25b   :  { %5000 = vst [vmem:[#allocation42_spill] sm:$0xff] %v4437_v52 }
 0x25c   :  { %5003 = vst [vmem:[#allocation45_spill] sm:$0xff] %v4447_v53 }
 0x25f   :  { %v1487_v38 = vpop.f32.mrf.mxu0 }
 0x260   :  { %v4454_v34 = vpop.f32.mrf.mxu2 }
 0x261   :  { %5005 = vst [vmem:[#allocation47_spill] sm:$0xff] %v4454_v34  ;;  %3313 = vmatmul.msk.bf16.gmra.mxu1 %vm944_vm1, %v3473_v19  ;;  %v3499_v19 = vld [vmem:[%s4954_s0 + $0x2f0] sm:$0xff] }
 0x262   :  { %3282 = vmatmul.msk.bf16.gmra.mxu0 %vm944_vm1, %v3442_v13  ;;  %v4452_v63 = vpop.f32.mrf.mxu3  ;;  %v4456_v49 = vpop.f32.mrf.mxu1 }
 0x263   :  { %5006 = vst [vmem:[#allocation48_spill] sm:$0xff] %v4456_v49 }
 0x267   :  { %v1489_v51 = vpop.f32.mrf.mxu0  ;;  %3338 = vmatmul.msk.bf16.gmra.mxu2 %vm944_vm1, %v3498_v24 }
 0x268   :  { %v4471_v13 = vpop.f32.mrf.mxu2  ;;  %v1490_v41 = vadd.f32 %v4238_v5, %v1489_v51 }
 0x269   :  { %5007 = vst [vmem:[#allocation49_spill] sm:$0xff] %v4471_v13 }
 0x26a   :  { %v4465_v46 = vpop.f32.mrf.mxu3  ;;  %v4473_v6 = vpop.f32.mrf.mxu1  ;;  %v2041_v51 = vmax.f32 %v1490_v41, 0.0 }
 0x26b   :  { %5008 = vst [vmem:[#allocation50_spill] sm:$0xff] %v4473_v6 }
 0x26f   :  { %v1492_v2 = vpop.f32.mrf.mxu0 }
 0x270   :  { %v4478_v58 = vpop.f32.mrf.mxu2 }
 0x271   :  { %5009 = vst [vmem:[#allocation51_spill] sm:$0xff] %v4478_v58  ;;  %3314 = vmatmul.msk.bf16.gmra.mxu1 %vm944_vm1, %v3474_v55  ;;  %v4508_v55 = vld [vmem:[%s4955_s1] sm:$0xff] }
 0x272   :  { %3283 = vmatmul.msk.bf16.gmra.mxu0 %vm944_vm1, %v3443_v12  ;;  %v4476_v60 = vpop.f32.mrf.mxu3  ;;  %v4480_v43 = vpop.f32.mrf.mxu1  ;;  %v3444_v12 = vld [vmem:[%s4954_s0 + $0x138] sm:$0xff]  ;;  %v2382_v58 = vunpack.c.l.b16 %v4508_v55 }
 0x273   :  { %5010 = vst [vmem:[#allocation52_spill] sm:$0xff] %v4480_v43 }
 0x277   :  { %v1494_v24 = vpop.f32.mrf.mxu0  ;;  %3339 = vmatmul.msk.bf16.gmra.mxu2 %vm944_vm1, %v3499_v19 }
 0x278   :  { %v4495_v48 = vpop.f32.mrf.mxu2  ;;  %v1495_v13 = vadd.f32 %v4238_v5, %v1494_v24 }
 0x279   :  { %5011 = vst [vmem:[#allocation53_spill] sm:$0xff] %v4495_v48 }
 0x27a   :  { %v4489_v20 = vpop.f32.mrf.mxu3  ;;  %v4497_v59 = vpop.f32.mrf.mxu1  ;;  %v2043_v6 = vmax.f32 %v1495_v13, 0.0 }
 0x27b   :  { %5012 = vst [vmem:[#allocation54_spill] sm:$0xff] %v4497_v59  ;;  %v3445_v59 = vld [vmem:[%s4954_s0 + $0x140] sm:$0xff] }
 0x27f   :  { %v1497_v52 = vpop.f32.mrf.mxu0 }
 0x280   :  { %v1498_v17 = vadd.f32 %v4238_v5, %v1497_v52  ;;  %v4503_v19 = vpop.f32.mrf.mxu2  ;;  %v3500_v52 = vld [vmem:[%s4954_s0 + $0x2f8] sm:$0xff] }
 0x281   :  { %5013 = vst [vmem:[#allocation55_spill] sm:$0xff] %v4503_v19  ;;  %v1493_v19 = vadd.f32 %v4238_v5, %v1492_v2 }
 0x282   :  { %3284 = vmatmul.msk.bf16.gmra.mxu0 %vm944_vm1, %v3444_v12  ;;  %v4500_v34 = vpop.f32.mrf.mxu3  ;;  %v4513_v48 = vpop.f32.mrf.mxu1  ;;  %v2398_v12 = vpack.c.b16 %v2382_v58, %v2382_v58  ;;  %v2044_v36 = vmax.f32 %v1498_v17, 0.0  ;;  %v1485_v17 = vadd.f32 %v4238_v5, %v4424_v37 }
 0x283   :  { %v2042_v24 = vmax.f32 %v1493_v19, 0.0 }
 0x284   :  { %2438 = vmatmul.bf16.vlgmr.msrb.gmra.mxu1 %v2398_v12 }
 0x285   :  { %v2276_v13 = vpack.c.bf16 %v2043_v6, %v2042_v24 }
 0x287   :  { %v1499_v8 = vpop.f32.mrf.mxu0  ;;  %3340 = vmatmul.msk.bf16.gmra.mxu2 %vm944_vm1, %v3500_v52 }
 0x288   :  { %v1500_v22 = vadd.f32 %v4238_v5, %v1499_v8  ;;  %v1488_v8 = vadd.f32 %v4238_v5, %v1487_v38  ;;  %v4525_v58 = vpop.f32.mrf.mxu2 }
 0x289   :  { %5014 = vst [vmem:[#allocation56_spill] sm:$0xff] %v4525_v58 }
 0x28a   :  { %v2045_v53 = vmax.f32 %v1500_v22, 0.0  ;;  %v4527_v2 = vpop.f32.mrf.mxu3  ;;  %v2040_v38 = vmax.f32 %v1488_v8, 0.0 }
 0x28c   :  { %v2277_v49 = vpack.c.bf16 %v2045_v53, %v2044_v36  ;;  %v4531_v53 = vpop.f32.mrf.mxu1  ;;  %v1483_v36 = vadd.f32 %v4238_v5, %v4414_v47  ;;  %v2275_v19 = vpack.c.bf16 %v2041_v51, %v2040_v38 }
 0x28e   :  { %2469 = vmatpush.bf16.msra.mxu1 %v2277_v49  ;;  %v2039_v49 = vmax.f32 %v1485_v17, 0.0  ;;  %v2038_v52 = vmax.f32 %v1483_v36, 0.0  ;;  %v4557_v36 = vld [vmem:[%s4955_s1 + $0x8] sm:$0xff] }
 0x28f   :  { %v1502_v22 = vpop.f32.mrf.mxu0  ;;  %v2385_v38 = vunpack.c.h.b16 %v4557_v36 }
 0x290   :  { %v1503_v12 = vadd.f32 %v4238_v5, %v1502_v22  ;;  %v4537_v58 = vpop.f32.mrf.mxu2  ;;  %v2274_v41 = vpack.c.bf16 %v2039_v49, %v2038_v52 }
 0x292   :  { %3285 = vmatmul.msk.bf16.gmra.mxu0 %vm944_vm1, %v3445_v59  ;;  %2470 = vmatpush.bf16.msra.mxu1 %v2276_v13  ;;  %v4542_v43 = vpop.f32.mrf.mxu3  ;;  %v2046_v47 = vmax.f32 %v1503_v12, 0.0 }
 0x294   :  { %v4540_v24 = vpop.f32.mrf.mxu1 }
 0x296   :  { %2471 = vmatpush.bf16.msra.mxu1 %v2275_v19 }
 0x297   :  { %v1504_v37 = vpop.f32.mrf.mxu0 }
 0x298   :  { %v1505_v6 = vadd.f32 %v4238_v5, %v1504_v37  ;;  %v4547_v17 = vpop.f32.mrf.mxu2 }
 0x299   :  { %5015 = vst [vmem:[#allocation57_spill] sm:$0xff] %v4547_v17 }
 0x29a   :  { %v2047_v8 = vmax.f32 %v1505_v6, 0.0  ;;  %2472 = vmatpush.bf16.msra.mxu1 %v2274_v41  ;;  %v4552_v13 = vpop.f32.mrf.mxu3 }
 0x29c   :  { %v4544_v59 = vpack.c.bf16 %v2047_v8, %v2046_v47  ;;  %v4549_v51 = vpop.f32.mrf.mxu1 }
 0x29e   :  { %2473 = vmatpush.bf16.msra.mxu1 %v4406_v23 }
 0x29f   :  { %v1507_v22 = vpop.f32.mrf.mxu0 }
 0x2a0   :  { %v1508_v49 = vadd.f32 %v4238_v5, %v1507_v22  ;;  %v4562_v23 = vpop.f32.mrf.mxu2 }
 0x2a1   :  { %5016 = vst [vmem:[#allocation58_spill] sm:$0xff] %v4562_v23 }
 0x2a2   :  { %2474 = vmatpush.bf16.msra.mxu1 %v4372_v40  ;;  %v2401_v40 = vpack.c.b16 %v2385_v38, %v2385_v38  ;;  %v2048_v37 = vmax.f32 %v1508_v49, 0.0  ;;  %v4569_v47 = vpop.f32.mrf.mxu3 }
 0x2a4   :  { %v1662_v12 = vpop.f32.mrf.mxu1 }
 0x2a6   :  { %2475 = vmatpush.bf16.msra.mxu1 %v4336_v28  ;;  %v1663_v28 = vadd.f32 %v4238_v5, %v1662_v12 }
 0x2a7   :  { %v1509_v19 = vpop.f32.mrf.mxu0 }
 0x2a8   :  { %v1510_v52 = vadd.f32 %v4238_v5, %v1509_v19  ;;  %v4572_v8 = vpop.f32.mrf.mxu2  ;;  %v2110_v38 = vmax.f32 %v1663_v28, 0.0 }
 0x2a9   :  { %5017 = vst [vmem:[#allocation59_spill] sm:$0xff] %v4572_v8 }
 0x2aa   :  { %v2049_v6 = vmax.f32 %v1510_v52, 0.0  ;;  %2476 = vmatpush.bf16.msra.mxu1 %v4301_v39 }
 0x2ac   :  { %v4567_v41 = vpack.c.bf16 %v2049_v6, %v2048_v37  ;;  %v1664_v19 = vpop.f32.mrf.mxu1 }
 0x2ad   :  { %2477 = vmatmul.bf16.vlgmr.msra.gmra.mxu1 %v2401_v40  ;;  %v1665_v49 = vadd.f32 %v4238_v5, %v1664_v19  ;;  %v4582_v40 = vpop.f32.mrf.mxu3 }
 0x2ae   :  { %2508 = vmatpush.bf16.msrb.mxu1 %v4319_v3 }
 0x2af   :  { %v1512_v22 = vpop.f32.mrf.mxu0  ;;  %v2111_v39 = vmax.f32 %v1665_v49, 0.0  ;;  %v4594_v49 = vld [vmem:[%s4955_s1 + $0x18] sm:$0xff] }
 0x2b0   :  { %v1513_v3 = vadd.f32 %v4238_v5, %v1512_v22  ;;  %v4580_v37 = vpop.f32.mrf.mxu2  ;;  %5019 = vst [vmem:[#allocation61_spill] sm:$0xff] %v4594_v49 }
 0x2b1   :  { %v4578_v52 = vpack.c.bf16 %v2111_v39, %v2110_v38  ;;  %5018 = vst [vmem:[#allocation60_spill] sm:$0xff] %v4580_v37 }
 0x2b2   :  { %2509 = vmatpush.bf16.msrb.mxu1 %v4297_v10  ;;  %v2050_v28 = vmax.f32 %v1513_v3, 0.0 }
 0x2b4   :  { %v1667_v6 = vpop.f32.mrf.mxu1 }
 0x2b5   :  { %v1668_v22 = vadd.f32 %v4238_v5, %v1667_v6 }
 0x2b6   :  { %2510 = vmatpush.bf16.msrb.mxu1 %v4259_v16 }
 0x2b7   :  { %v1514_v12 = vpop.f32.mrf.mxu0  ;;  %v2112_v3 = vmax.f32 %v1668_v22, 0.0 }
 0x2b8   :  { %v1515_v10 = vadd.f32 %v4238_v5, %v1514_v12  ;;  %v1792_v19 = vpop.f32.mrf.mxu2 }
 0x2ba   :  { %2511 = vmatpush.bf16.msrb.mxu1 %v4220_v18  ;;  %v2051_v23 = vmax.f32 %v1515_v10, 0.0  ;;  %v4596_v18 = vpop.f32.mrf.mxu3 }
 0x2bc   :  { %v4587_v16 = vpack.c.bf16 %v2051_v23, %v2050_v28  ;;  %v1669_v39 = vpop.f32.mrf.mxu1  ;;  %v1793_v23 = vadd.f32 %v4238_v5, %v1792_v19 }
 0x2bd   :  { %v1670_v12 = vadd.f32 %v4238_v5, %v1669_v39 }
 0x2be   :  { %2512 = vmatpush.bf16.msrb.mxu1 %v4194_v30  ;;  %v2388_v30 = vunpack.c.l.b16 %v4594_v49  ;;  %v2162_v8 = vmax.f32 %v1793_v23, 0.0 }
 0x2bf   :  { %v1517_v38 = vpop.f32.mrf.mxu0  ;;  %v2113_v10 = vmax.f32 %v1670_v12, 0.0 }
 0x2c0   :  { %v1794_v28 = vpop.f32.mrf.mxu2  ;;  %v2404_v17 = vpack.c.b16 %v2388_v30, %v2388_v30 }
 0x2c1   :  { %v4603_v6 = vpack.c.bf16 %v2113_v10, %v2112_v3  ;;  %v1795_v22 = vadd.f32 %v4238_v5, %v1794_v28 }
 0x2c2   :  { %2513 = vmatpush.bf16.msrb.mxu1 %v4162_v14  ;;  %v1518_v14 = vadd.f32 %v4238_v5, %v1517_v38  ;;  %v4609_v12 = vpop.f32.mrf.mxu3 }
 0x2c4   :  { %v2052_v49 = vmax.f32 %v1518_v14, 0.0  ;;  %v1860_v14 = vadd.f32 %v4238_v5, %v3909_v1 }
 0x2c6   :  { %2514 = vmatpush.bf16.msrb.mxu1 %v4128_v29  ;;  %v2163_v29 = vmax.f32 %v1795_v22, 0.0  ;;  %v4641_v22 = vld [vmem:[%s4955_s1 + $0x20] sm:$0xff] }
 0x2c7   :  { %v1519_v37 = vpop.f32.mrf.mxu0 }
 0x2c8   :  { %v1520_v39 = vadd.f32 %v4238_v5, %v1519_v37  ;;  %v4611_v38 = vpack.c.bf16 %v2163_v29, %v2162_v8  ;;  %v4619_v37 = vpop.f32.mrf.mxu1  ;;  %v2189_v29 = vmax.f32 %v1860_v14, 0.0 }
 0x2ca   :  { %2515 = vmatpush.bf16.msrb.mxu1 %v4096_v45  ;;  %v2053_v19 = vmax.f32 %v1520_v39, 0.0  ;;  %v1797_v45 = vpop.f32.mrf.mxu2 }
 0x2cc   :  { %v4613_v3 = vpack.c.bf16 %v2053_v19, %v2052_v49 }
 0x2cd   :  { %2516 = vmatmul.bf16.vlgmr.msrb.gmra.mxu1 %v2404_v17  ;;  %v4623_v17 = vpop.f32.mrf.mxu3 }
 0x2ce   :  { %2547 = vmatpush.bf16.msra.mxu1 %v4293_v32  ;;  %v1798_v32 = vadd.f32 %v4238_v5, %v1797_v45  ;;  %v1848_v45 = vadd.f32 %v4238_v5, %v3841_v26 }
 0x2cf   :  { %v4616_v30 = vpop.f32.mrf.mxu0 }
 0x2d0   :  { %v2164_v49 = vmax.f32 %v1798_v32, 0.0  ;;  %v1850_v32 = vadd.f32 %v4238_v5, %v3853_v21 }
 0x2d2   :  { %2548 = vmatpush.bf16.msra.mxu1 %v4273_v57  ;;  %v1799_v23 = vpop.f32.mrf.mxu2  ;;  %v2185_v26 = vmax.f32 %v1850_v32, 0.0  ;;  %v1835_v32 = vadd.f32 %v4238_v5, %v3775_v27  ;;  %v1830_v27 = vadd.f32 %v4238_v5, %v3751_v11 }
 0x2d3   :  { %v1800_v10 = vadd.f32 %v4238_v5, %v1799_v23 }
 0x2d5   :  { %v2165_v57 = vmax.f32 %v1800_v10, 0.0  ;;  %v4645_v39 = vpop.f32.mrf.mxu3 }
 0x2d6   :  { %2549 = vmatpush.bf16.msra.mxu1 %v4231_v50  ;;  %v1858_v50 = vadd.f32 %v4238_v5, %v3897_v54  ;;  %v1855_v54 = vadd.f32 %v4238_v5, %v3879_v44  ;;  %v1843_v44 = vadd.f32 %v4238_v5, %v3815_v61  ;;  %v1840_v61 = vadd.f32 %v4238_v5, %v3801_v56 }
 0x2d7   :  { %v4625_v8 = vpop.f32.mrf.mxu0  ;;  %v4633_v28 = vpack.c.bf16 %v2165_v57, %v2164_v49  ;;  %v2384_v56 = vunpack.c.l.b16 %v4557_v36 }
 0x2d8   :  { %v2188_v1 = vmax.f32 %v1858_v50, 0.0  ;;  %v2187_v23 = vmax.f32 %v1855_v54, 0.0  ;;  %v2184_v50 = vmax.f32 %v1848_v45, 0.0  ;;  %v2383_v45 = vunpack.c.h.b16 %v4508_v55 }
 0x2da   :  { %2550 = vmatpush.bf16.msra.mxu1 %v4203_v9  ;;  %v4636_v9 = vpop.f32.mrf.mxu1  ;;  %v2349_v49 = vpack.c.bf16 %v2189_v29, %v2188_v1  ;;  %v2182_v1 = vmax.f32 %v1843_v44, 0.0  ;;  %v2399_v44 = vpack.c.b16 %v2383_v45, %v2383_v45  ;;  %v2177_v45 = vmax.f32 %v1830_v27, 0.0 }
 0x2db   :  { %v1970_v27 = vadd.f32 %v4238_v5, %v4609_v12  ;;  %v1958_v12 = vadd.f32 %v4238_v5, %v4542_v43 }
 0x2dc   :  { %2451 = vmatmul.bf16.vlgmr.msrb.gmra.mxu2 %v2399_v44 }
 0x2dd   :  { %v1977_v54 = vpop.f32.mrf.mxu3 }
 0x2de   :  { %2551 = vmatpush.bf16.msra.mxu1 %v4173_v33  ;;  %v1853_v33 = vadd.f32 %v4238_v5, %v3867_v31  ;;  %v1978_v36 = vadd.f32 %v4238_v5, %v1977_v54  ;;  %v1973_v54 = vadd.f32 %v4238_v5, %v4623_v17 }
 0x2df   :  { %v4649_v19 = vpop.f32.mrf.mxu0 }
 0x2e0   :  { %v2186_v31 = vmax.f32 %v1853_v33, 0.0  ;;  %v4666_v33 = vpop.f32.mrf.mxu2  ;;  %v2236_v11 = vmax.f32 %v1978_v36, 0.0  ;;  %v1965_v36 = vadd.f32 %v4238_v5, %v4582_v40 }
 0x2e2   :  { %2552 = vmatpush.bf16.msra.mxu1 %v4141_v25  ;;  %v2391_v25 = vunpack.c.h.b16 %v4641_v22  ;;  %v4660_v57 = vpop.f32.mrf.mxu1  ;;  %v2348_v21 = vpack.c.bf16 %v2187_v23, %v2186_v31  ;;  %v2181_v23 = vmax.f32 %v1840_v61, 0.0 }
 0x2e4   :  { %v2407_v10 = vpack.c.b16 %v2391_v25, %v2391_v25  ;;  %v2347_v25 = vpack.c.bf16 %v2185_v26, %v2184_v50  ;;  %v2400_v50 = vpack.c.b16 %v2384_v56, %v2384_v56 }
 0x2e5   :  { %v1979_v55 = vpop.f32.mrf.mxu3 }
 0x2e6   :  { %2553 = vmatpush.bf16.msra.mxu1 %v4107_v4  ;;  %v1845_v4 = vadd.f32 %v4238_v5, %v3829_v35  ;;  %v1833_v35 = vadd.f32 %v4238_v5, %v3761_v15  ;;  %v1828_v15 = vadd.f32 %v4238_v5, %v3741_v7  ;;  %2464 = vmatmul.bf16.vlgmr.msrb.gmra.mxu3 %v2400_v50 }
 0x2e7   :  { %v4664_v14 = vpop.f32.mrf.mxu0  ;;  %v1980_v61 = vadd.f32 %v4238_v5, %v1979_v55  ;;  %v1968_v55 = vadd.f32 %v4238_v5, %v4596_v18 }
 0x2e8   :  { %v2183_v29 = vmax.f32 %v1845_v4, 0.0  ;;  %v4680_v4 = vpop.f32.mrf.mxu2  ;;  %v2178_v26 = vmax.f32 %v1833_v35, 0.0 }
 0x2e9   :  { %v2237_v35 = vmax.f32 %v1980_v61, 0.0  ;;  %v2232_v61 = vmax.f32 %v1968_v55, 0.0  ;;  %v1955_v55 = vadd.f32 %v4238_v5, %v4527_v2 }
 0x2ea   :  { %2554 = vmatpush.bf16.msra.mxu1 %v4075_v62  ;;  %v1838_v62 = vadd.f32 %v4238_v5, %v3789_v42  ;;  %v4677_v42 = vpop.f32.mrf.mxu1 }
 0x2ec   :  { %v2180_v31 = vmax.f32 %v1838_v62, 0.0 }
 0x2ed   :  { %2555 = vmatmul.bf16.vlgmr.msra.gmra.mxu1 %v2407_v10  ;;  %v2346_v10 = vpack.c.bf16 %v2183_v29, %v2182_v1  ;;  %v1823_v1 = vadd.f32 %v4238_v5, %v3725_v0  ;;  %v5020_v29 = vld [vmem:[#allocation2_spill] sm:$0xff] }
 0x2ee   :  { %2586 = vmatpush.bf16.msrb.mxu1 %v2349_v49  ;;  %v2345_v62 = vpack.c.bf16 %v2181_v23, %v2180_v31  ;;  %v1825_v7 = vadd.f32 %v4238_v5, %v5020_v29  ;;  %v1975_v31 = vadd.f32 %v4238_v5, %v4645_v39  ;;  %v1963_v39 = vadd.f32 %v4238_v5, %v4569_v47 }
 0x2ef   :  { %v1532_v49 = vpop.f32.mrf.mxu0  ;;  %v2174_v23 = vmax.f32 %v1823_v1, 0.0  ;;  %v2233_v1 = vmax.f32 %v1970_v27, 0.0  ;;  %v1530_v27 = vadd.f32 %v4238_v5, %v4664_v14 }
 0x2f0   :  { %v2175_v0 = vmax.f32 %v1825_v7, 0.0  ;;  %v4698_v50 = vpop.f32.mrf.mxu2 }
 0x2f2   :  { %2587 = vmatpush.bf16.msrb.mxu1 %v2348_v21  ;;  %v2179_v21 = vmax.f32 %v1835_v32, 0.0  ;;  %v4692_v32 = vpop.f32.mrf.mxu1  ;;  %v2342_v17 = vpack.c.bf16 %v2175_v0, %v2174_v23  ;;  %v2228_v23 = vmax.f32 %v1958_v12, 0.0  ;;  %v1523_v12 = vadd.f32 %v4238_v5, %v4616_v30 }
 0x2f4   :  { %v2344_v56 = vpack.c.bf16 %v2179_v21, %v2178_v26  ;;  %v2234_v26 = vmax.f32 %v1973_v54, 0.0  ;;  %v2235_v21 = vmax.f32 %v1975_v31, 0.0  ;;  %v1533_v31 = vadd.f32 %v4238_v5, %v1532_v49 }
 0x2f5   :  { %v1528_v49 = vadd.f32 %v4238_v5, %v4649_v19  ;;  %v1950_v19 = vadd.f32 %v4238_v5, %v4489_v20  ;;  %v2054_v30 = vmax.f32 %v1523_v12, 0.0 }
 0x2f6   :  { %2588 = vmatpush.bf16.msrb.mxu1 %v2347_v25  ;;  %v2176_v25 = vmax.f32 %v1828_v15, 0.0  ;;  %v2373_v15 = vpack.c.bf16 %v2237_v35, %v2236_v11  ;;  %v2372_v29 = vpack.c.bf16 %v2235_v21, %v2234_v26  ;;  %v2371_v11 = vpack.c.bf16 %v2233_v1, %v2232_v61 }
 0x2f7   :  { %v2058_v21 = vmax.f32 %v1533_v31, 0.0  ;;  %v2057_v1 = vmax.f32 %v1530_v27, 0.0 }
 0x2f8   :  { %v2343_v44 = vpack.c.bf16 %v2177_v45, %v2176_v25  ;;  %v4710_v18 = vpop.f32.mrf.mxu2  ;;  %v1960_v25 = vadd.f32 %v4238_v5, %v4552_v13  ;;  %v2230_v45 = vmax.f32 %v1963_v39, 0.0  ;;  %v1953_v13 = vadd.f32 %v4238_v5, %v4500_v34 }
 0x2f9   :  { %v2227_v39 = vmax.f32 %v1955_v55, 0.0  ;;  %v1525_v34 = vadd.f32 %v4238_v5, %v4625_v8 }
 0x2fa   :  { %2589 = vmatpush.bf16.msrb.mxu1 %v2346_v10  ;;  %v1534_v10 = vpop.f32.mrf.mxu0  ;;  %v4708_v7 = vpop.f32.mrf.mxu1  ;;  %v2229_v0 = vmax.f32 %v1960_v25, 0.0  ;;  %v2056_v25 = vmax.f32 %v1528_v49, 0.0 }
 0x2fb   :  { %v1535_v35 = vadd.f32 %v4238_v5, %v1534_v10 }
 0x2fc   :  { %v2283_v8 = vpack.c.bf16 %v2057_v1, %v2056_v25 }
 0x2fd   :  { %v2059_v10 = vmax.f32 %v1535_v35, 0.0 }
 0x2fe   :  { %2590 = vmatpush.bf16.msrb.mxu1 %v2345_v62 }
 0x2ff   :  { %v2284_v14 = vpack.c.bf16 %v2059_v10, %v2058_v21 }
 0x300   :  { %v4730_v61 = vpop.f32.mrf.mxu2 }
 0x302   :  { %2591 = vmatpush.bf16.msrb.mxu1 %v2344_v56  ;;  %v1537_v62 = vpop.f32.mrf.mxu0  ;;  %v2231_v56 = vmax.f32 %v1965_v36, 0.0  ;;  %v2369_v36 = vpack.c.bf16 %v2229_v0, %v2228_v23 }
 0x303   :  { %v1538_v47 = vadd.f32 %v4238_v5, %v1537_v62  ;;  %v1687_v62 = vpop.f32.mrf.mxu1 }
 0x305   :  { %v2060_v43 = vmax.f32 %v1538_v47, 0.0  ;;  %v4741_v47 = vld [vmem:[%s4953_s3] ss:$0 sm:$0xff] }
 0x306   :  { %2592 = vmatpush.bf16.msrb.mxu1 %v2343_v44  ;;  %v2370_v44 = vpack.c.bf16 %v2231_v56, %v2230_v45  ;;  %v2055_v56 = vmax.f32 %v1525_v34, 0.0  ;;  %v1943_v20 = vadd.f32 %v4741_v47, %v4452_v63  ;;  %v1688_v27 = vadd.f32 %v4741_v47, %v1687_v62 }
 0x307   :  { %v1658_v34 = vadd.f32 %v4741_v47, %v4540_v24  ;;  %v1683_v62 = vadd.f32 %v4741_v47, %v4692_v32  ;;  %v1685_v1 = vadd.f32 %v4741_v47, %v4708_v7  ;;  %v1655_v24 = vadd.f32 %v4741_v47, %v4531_v53 }
 0x308   :  { %v1678_v32 = vadd.f32 %v4741_v47, %v4660_v57  ;;  %v1680_v7 = vadd.f32 %v4741_v47, %v4677_v42  ;;  %v1673_v57 = vadd.f32 %v4741_v47, %v4619_v37  ;;  %v1675_v42 = vadd.f32 %v4741_v47, %v4636_v9 }
 0x309   :  { %v2118_v25 = vmax.f32 %v1683_v62, 0.0 }
 0x30a   :  { %2593 = vmatpush.bf16.msrb.mxu1 %v2342_v17  ;;  %v1539_v40 = vpop.f32.mrf.mxu0  ;;  %v2226_v17 = vmax.f32 %v1953_v13, 0.0  ;;  %v4752_v13 = vpop.f32.mrf.mxu2  ;;  %v2114_v37 = vmax.f32 %v1673_v57, 0.0  ;;  %v5033_v57 = vld [vmem:[#allocation61_spill] sm:$0xff] }
 0x30b   :  { %v1540_v54 = vadd.f32 %v4238_v5, %v1539_v40  ;;  %v2225_v40 = vmax.f32 %v1950_v19, 0.0  ;;  %v1689_v0 = vpop.f32.mrf.mxu1 }
 0x30c   :  { %v2368_v45 = vpack.c.bf16 %v2227_v39, %v2226_v17  ;;  %v1690_v10 = vadd.f32 %v4741_v47, %v1689_v0  ;;  %v2120_v17 = vmax.f32 %v1688_v27, 0.0  ;;  %v5021_v39 = vld [vmem:[#allocation11_spill] sm:$0xff] }
 0x30e   :  { %2625 = vmatpush.bf16.msra.mxu1 %v2373_v15  ;;  %v2061_v15 = vmax.f32 %v1540_v54, 0.0  ;;  %v2282_v54 = vpack.c.bf16 %v2055_v56, %v2054_v30 }
 0x310   :  { %v2285_v26 = vpack.c.bf16 %v2061_v15, %v2060_v43  ;;  %v2240_v43 = vld [vmem:[%s4955_s1 + $0x10] sm:$0xff]  ;;  %v2222_v15 = vmax.f32 %v1943_v20, 0.0  ;;  %v2116_v20 = vmax.f32 %v1678_v32, 0.0 }
 0x311   :  { %v2387_v55 = vunpack.c.h.b16 %v2240_v43 }
 0x312   :  { %2626 = vmatpush.bf16.msra.mxu1 %v2372_v29  ;;  %2482 = vmatpush.bf16.msra.mxu2 %v2285_v26  ;;  %v1542_v2 = vpop.f32.mrf.mxu0  ;;  %v1948_v29 = vadd.f32 %v4238_v5, %v4476_v60  ;;  %v1945_v5 = vadd.f32 %v4741_v47, %v4465_v46  ;;  %v1817_v19 = vpop.f32.mrf.mxu2 }
 0x313   :  { %v2403_v49 = vpack.c.b16 %v2387_v55, %v2387_v55  ;;  %v5027_v55 = vld [vmem:[#allocation41_spill] sm:$0xff] }
 0x314   :  { %v2224_v60 = vmax.f32 %v1948_v29, 0.0  ;;  %v2223_v63 = vmax.f32 %v1945_v5, 0.0  ;;  %v5022_v29 = vld [vmem:[#allocation9_spill] sm:$0xff]  ;;  %v2117_v5 = vmax.f32 %v1680_v7, 0.0 }
 0x316   :  { %2627 = vmatpush.bf16.msra.mxu1 %v2371_v11  ;;  %2483 = vmatpush.bf16.msra.mxu2 %v2284_v14  ;;  %v1543_v11 = vadd.f32 %v4741_v47, %v1542_v2  ;;  %v2366_v21 = vpack.c.bf16 %v2223_v63, %v2222_v15  ;;  %v1660_v2 = vadd.f32 %v4741_v47, %v4549_v51  ;;  %v2108_v51 = vmax.f32 %v1658_v34, 0.0 }
 0x317   :  { %v2313_v15 = vpack.c.bf16 %v2117_v5, %v2116_v20  ;;  %v5035_v20 = vld [vmem:[#allocation49_spill] sm:$0xff] }
 0x318   :  { %v2062_v31 = vmax.f32 %v1543_v11, 0.0  ;;  %v2109_v12 = vmax.f32 %v1660_v2, 0.0  ;;  %v1768_v5 = vadd.f32 %v4741_v47, %v5035_v20  ;;  %v5053_v20 = vld [vmem:[#allocation29_spill] sm:$0xff] }
 0x31a   :  { %2628 = vmatpush.bf16.msra.mxu1 %v2370_v44  ;;  %2484 = vmatpush.bf16.msra.mxu2 %v2283_v8  ;;  %v1544_v35 = vpop.f32.mrf.mxu0  ;;  %v2367_v44 = vpack.c.bf16 %v2225_v40, %v2224_v60  ;;  %v5024_v8 = vld [vmem:[#allocation54_spill] sm:$0xff]  ;;  %v2107_v60 = vmax.f32 %v1655_v24, 0.0  ;;  %v2309_v40 = vpack.c.bf16 %v2109_v12, %v2108_v51  ;;  %v1819_v63 = vpop.f32.mrf.mxu2  ;;  %v1808_v24 = vadd.f32 %v4741_v47, %v4698_v50 }
 0x31b   :  { %v1545_v23 = vadd.f32 %v4741_v47, %v1544_v35  ;;  %v1650_v11 = vadd.f32 %v4741_v47, %v5024_v8  ;;  %v5025_v35 = vld [vmem:[#allocation48_spill] sm:$0xff]  ;;  %v1810_v12 = vadd.f32 %v4741_v47, %v4710_v18  ;;  %v1803_v50 = vadd.f32 %v4741_v47, %v4666_v33  ;;  %v5032_v8 = vld [vmem:[#allocation55_spill] sm:$0xff] }
 0x31c   :  { %v2168_v18 = vmax.f32 %v1808_v24, 0.0 }
 0x31d   :  { %v2063_v46 = vmax.f32 %v1545_v23, 0.0 }
 0x31e   :  { %2629 = vmatpush.bf16.msra.mxu1 %v2369_v36  ;;  %2485 = vmatpush.bf16.msra.mxu2 %v2282_v54  ;;  %v2121_v36 = vmax.f32 %v1690_v10, 0.0  ;;  %v1643_v54 = vadd.f32 %v4741_v47, %v5025_v35  ;;  %v1818_v10 = vadd.f32 %v4741_v47, %v1817_v19 }
 0x31f   :  { %v2286_v26 = vpack.c.bf16 %v2063_v46, %v2062_v31  ;;  %v5026_v31 = vld [vmem:[#allocation50_spill] sm:$0xff]  ;;  %v5028_v46 = vld [vmem:[#allocation45_spill] sm:$0xff] }
 0x320   :  { %v2315_v14 = vpack.c.bf16 %v2121_v36, %v2120_v17  ;;  %v1645_v23 = vadd.f32 %v4741_v47, %v5026_v31  ;;  %v1640_v27 = vadd.f32 %v4741_v47, %v5028_v46  ;;  %v2172_v36 = vmax.f32 %v1818_v10, 0.0 }
 0x321   :  { %2502 = vmatpush.bf16.msra.mxu3 %v2286_v26  ;;  %v1820_v26 = vadd.f32 %v4741_v47, %v1819_v63  ;;  %v2152_v63 = vmax.f32 %v1768_v5, 0.0  ;;  %v1923_v5 = vadd.f32 %v4741_v47, %v5053_v20 }
 0x322   :  { %2630 = vmatpush.bf16.msra.mxu1 %v2368_v45  ;;  %2486 = vmatpush.bf16.msra.mxu2 %v4613_v3  ;;  %v1653_v3 = vadd.f32 %v4741_v47, %v4513_v48  ;;  %v2386_v45 = vunpack.c.l.b16 %v2240_v43  ;;  %v5023_v48 = vld [vmem:[#allocation52_spill] sm:$0xff]  ;;  %v2115_v43 = vmax.f32 %v1675_v42, 0.0  ;;  %v2101_v62 = vmax.f32 %v1640_v27, 0.0  ;;  %v5034_v42 = vld [vmem:[#allocation38_spill] sm:$0xff] }
 0x323   :  { %v1648_v56 = vadd.f32 %v4741_v47, %v5023_v48  ;;  %v2173_v34 = vmax.f32 %v1820_v26, 0.0  ;;  %v5030_v48 = vld [vmem:[#allocation43_spill] sm:$0xff]  ;;  %v5041_v27 = vld [vmem:[#allocation60_spill] sm:$0xff] }
 0x324   :  { %2503 = vmatmul.bf16.vlgmr.msra.gmra.mxu3 %v2403_v49  ;;  %v2106_v53 = vmax.f32 %v1653_v3, 0.0  ;;  %v2102_v49 = vmax.f32 %v1643_v54, 0.0  ;;  %v2312_v17 = vpack.c.bf16 %v2115_v43, %v2114_v37  ;;  %v1813_v3 = vadd.f32 %v4741_v47, %v4730_v61  ;;  %v5029_v61 = vld [vmem:[#allocation56_spill] sm:$0xff] }
 0x325   :  { %2534 = vmatpush.bf16.msrb.mxu3 %v5021_v39  ;;  %v2104_v0 = vmax.f32 %v1648_v56, 0.0  ;;  %v2341_v19 = vpack.c.bf16 %v2173_v34, %v2172_v36  ;;  %v5038_v37 = vld [vmem:[#allocation44_spill] sm:$0xff]  ;;  %v1790_v10 = vadd.f32 %v4741_v47, %v5041_v27  ;;  %v2214_v27 = vmax.f32 %v1923_v5, 0.0  ;;  %v5072_v5 = vld [vmem:[#allocation21_spill] sm:$0xff] }
 0x326   :  { %2631 = vmatpush.bf16.msra.mxu1 %v2367_v44  ;;  %2487 = vmatpush.bf16.msra.mxu2 %v4587_v16  ;;  %v2119_v16 = vmax.f32 %v1685_v1, 0.0  ;;  %v2105_v44 = vmax.f32 %v1650_v11, 0.0  ;;  %v2308_v9 = vpack.c.bf16 %v2107_v60, %v2106_v53  ;;  %v2170_v32 = vmax.f32 %v1813_v3, 0.0  ;;  %v4841_v34 = vld [vmem:[%s4955_s1 + $0x30] sm:$0xff] }
 0x327   :  { %v1775_v11 = vadd.f32 %v4741_v47, %v5032_v8  ;;  %v2166_v60 = vmax.f32 %v1803_v50, 0.0  ;;  %v1763_v43 = vadd.f32 %v4741_v47, %v5038_v37  ;;  %v2161_v3 = vmax.f32 %v1790_v10, 0.0  ;;  %v5047_v50 = vld [vmem:[#allocation37_spill] sm:$0xff]  ;;  %v5057_v37 = vld [vmem:[#allocation18_spill] sm:$0xff] }
 0x328   :  { %v2314_v30 = vpack.c.bf16 %v2119_v16, %v2118_v25  ;;  %v2307_v39 = vpack.c.bf16 %v2105_v44, %v2104_v0  ;;  %v2169_v16 = vmax.f32 %v1810_v12, 0.0  ;;  %v5037_v44 = vld [vmem:[#allocation34_spill] sm:$0xff] }
 0x329   :  { %2535 = vmatpush.bf16.msrb.mxu3 %v5022_v29  ;;  %v2390_v29 = vunpack.c.l.b16 %v4641_v22  ;;  %v1778_v22 = vadd.f32 %v4741_v47, %v5029_v61  ;;  %v2155_v54 = vmax.f32 %v1775_v11, 0.0 }
 0x32a   :  { %2632 = vmatpush.bf16.msra.mxu1 %v2366_v21  ;;  %2488 = vmatpush.bf16.msra.mxu2 %v4567_v41  ;;  %v2402_v41 = vpack.c.b16 %v2386_v45, %v2386_v45  ;;  %v2103_v21 = vmax.f32 %v1645_v23, 0.0 }
 0x32b   :  { %v2406_v25 = vpack.c.b16 %v2390_v29, %v2390_v29  ;;  %v5044_v29 = vld [vmem:[#allocation40_spill] sm:$0xff] }
 0x32c   :  { %v2306_v1 = vpack.c.bf16 %v2103_v21, %v2102_v49  ;;  %v2150_v49 = vmax.f32 %v1763_v43, 0.0  ;;  %v1895_v43 = vadd.f32 %v4741_v47, %v5057_v37  ;;  %v5074_v37 = vld [vmem:[#allocation7_spill] sm:$0xff] }
 0x32d   :  { %2536 = vmatpush.bf16.msrb.mxu3 %v2315_v14  ;;  %v1815_v14 = vadd.f32 %v4741_v47, %v4752_v13  ;;  %v1805_v13 = vadd.f32 %v4741_v47, %v4680_v4  ;;  %v2389_v4 = vunpack.c.h.b16 %v5033_v57 }
 0x32e   :  { %2489 = vmatpush.bf16.msra.mxu2 %v4544_v59  ;;  %v1638_v59 = vadd.f32 %v4741_v47, %v5027_v55 }
 0x32f   :  { %v2171_v7 = vmax.f32 %v1815_v14, 0.0  ;;  %v2167_v33 = vmax.f32 %v1805_v13, 0.0  ;;  %v2405_v0 = vpack.c.b16 %v2389_v4, %v2389_v4  ;;  %v2394_v14 = vunpack.c.l.b16 %v4841_v34  ;;  %v5052_v4 = vld [vmem:[#allocation20_spill] sm:$0xff] }
 0x330   :  { %v2100_v2 = vmax.f32 %v1638_v59, 0.0  ;;  %v5040_v59 = vld [vmem:[#allocation59_spill] sm:$0xff]  ;;  %v1935_v13 = vadd.f32 %v4741_v47, %v5047_v50 }
 0x331   :  { %2537 = vmatpush.bf16.msrb.mxu3 %v2314_v30  ;;  %2490 = vmatmul.bf16.vlgmr.msra.gmra.mxu2 %v2402_v41  ;;  %v2340_v45 = vpack.c.bf16 %v2171_v7, %v2170_v32  ;;  %v5036_v30 = vld [vmem:[#allocation51_spill] sm:$0xff]  ;;  %v2338_v23 = vpack.c.bf16 %v2167_v33, %v2166_v60  ;;  %v1788_v46 = vadd.f32 %v4741_v47, %v5040_v59  ;;  %v5050_v33 = vld [vmem:[#allocation46_spill] sm:$0xff]  ;;  %v5059_v59 = vld [vmem:[#allocation28_spill] sm:$0xff] }
 0x332   :  { %2521 = vmatpush.bf16.msrb.mxu2 %v2309_v40  ;;  %v2305_v51 = vpack.c.bf16 %v2101_v62, %v2100_v2  ;;  %v2339_v40 = vpack.c.bf16 %v2169_v16, %v2168_v18  ;;  %v1770_v41 = vadd.f32 %v4741_v47, %v5036_v30  ;;  %v5043_v2 = vld [vmem:[#allocation58_spill] sm:$0xff] }
 0x333   :  { %v1785_v62 = vadd.f32 %v4741_v47, %v5043_v2  ;;  %v5054_v30 = vld [vmem:[#allocation30_spill] sm:$0xff] }
 0x334   :  { %v2153_v55 = vmax.f32 %v1770_v41, 0.0  ;;  %v1925_v41 = vadd.f32 %v4741_v47, %v5054_v30  ;;  %v1903_v30 = vadd.f32 %v4741_v47, %v5072_v5 }
 0x335   :  { %2538 = vmatpush.bf16.msrb.mxu3 %v2313_v15  ;;  %v5039_v15 = vld [vmem:[#allocation47_spill] sm:$0xff]  ;;  %v2159_v7 = vmax.f32 %v1785_v62, 0.0 }
 0x336   :  { %2522 = vmatpush.bf16.msrb.mxu2 %v2308_v9  ;;  %v1765_v9 = vadd.f32 %v4741_v47, %v5039_v15  ;;  %v2331_v36 = vpack.c.bf16 %v2153_v55, %v2152_v63  ;;  %v5058_v63 = vld [vmem:[#allocation27_spill] sm:$0xff]  ;;  %v2215_v10 = vmax.f32 %v1925_v41, 0.0 }
 0x337   :  { %v1918_v55 = vadd.f32 %v4741_v47, %v5058_v63 }
 0x338   :  { %v2151_v21 = vmax.f32 %v1765_v9, 0.0 }
 0x339   :  { %2539 = vmatpush.bf16.msrb.mxu3 %v2312_v17  ;;  %v5042_v17 = vld [vmem:[#allocation57_spill] sm:$0xff] }
 0x33a   :  { %2523 = vmatpush.bf16.msrb.mxu2 %v2307_v39  ;;  %v1783_v39 = vadd.f32 %v4741_v47, %v5042_v17  ;;  %v2330_v12 = vpack.c.bf16 %v2151_v21, %v2150_v49  ;;  %v5060_v21 = vld [vmem:[#allocation35_spill] sm:$0xff] }
 0x33b   :  { %v5061_v17 = vld [vmem:[#allocation15_spill] sm:$0xff] }
 0x33c   :  { %v2158_v32 = vmax.f32 %v1783_v39, 0.0  ;;  %v1888_v39 = vadd.f32 %v4741_v47, %v5061_v17  ;;  %v5077_v17 = vld [vmem:[#allocation6_spill] sm:$0xff] }
 0x33d   :  { %2540 = vmatpush.bf16.msrb.mxu3 %v4603_v6  ;;  %v1780_v6 = vadd.f32 %v4741_v47, %v4537_v58  ;;  %v2156_v58 = vmax.f32 %v1778_v22, 0.0 }
 0x33e   :  { %2524 = vmatpush.bf16.msrb.mxu2 %v2306_v1  ;;  %v2160_v1 = vmax.f32 %v1788_v46, 0.0  ;;  %v2334_v8 = vpack.c.bf16 %v2159_v7, %v2158_v32  ;;  %v1920_v46 = vadd.f32 %v4741_v47, %v5059_v59  ;;  %v2362_v32 = vpack.c.bf16 %v2215_v10, %v2214_v27 }
 0x33f   :  { %v2157_v53 = vmax.f32 %v1780_v6, 0.0  ;;  %v2243_v6 = vld [vmem:[%s4955_s1 + $0x28] sm:$0xff]  ;;  %v2206_v59 = vmax.f32 %v1903_v30, 0.0 }
 0x340   :  { %v2335_v22 = vpack.c.bf16 %v2161_v3, %v2160_v1  ;;  %v2392_v49 = vunpack.c.l.b16 %v2243_v6  ;;  %v2203_v1 = vmax.f32 %v1895_v43, 0.0  ;;  %v1873_v43 = vadd.f32 %v4741_v47, %v5074_v37  ;;  %v3538_v37 = vld [vmem:[%s4957_s4 + $0x18] sm:$0xff] }
 0x341   :  { %2541 = vmatpush.bf16.msrb.mxu3 %v4578_v52  ;;  %v5031_v52 = vld [vmem:[#allocation53_spill] sm:$0xff]  ;;  %v2333_v31 = vpack.c.bf16 %v2157_v53, %v2156_v58  ;;  %v2219_v58 = vmax.f32 %v1935_v13, 0.0  ;;  %v5067_v13 = vld [vmem:[#allocation14_spill] sm:$0xff] }
 0x342   :  { %2525 = vmatpush.bf16.msrb.mxu2 %v2305_v51  ;;  %v1773_v56 = vadd.f32 %v4741_v47, %v5031_v52  ;;  %v2410_v51 = vpack.c.b16 %v2394_v14, %v2394_v14  ;;  %v5049_v52 = vld [vmem:[#allocation33_spill] sm:$0xff]  ;;  %v2408_v7 = vpack.c.b16 %v2392_v49, %v2392_v49 }
 0x343   :  { %v5063_v14 = vld [vmem:[#allocation25_spill] sm:$0xff] }
 0x344   :  { %2542 = vmatmul.bf16.vlgmr.msrb.gmra.mxu3 %v2406_v25  ;;  %v2154_v35 = vmax.f32 %v1773_v56, 0.0  ;;  %v5046_v25 = vld [vmem:[#allocation36_spill] sm:$0xff]  ;;  %2594 = vmatmul.bf16.vlgmr.msrb.gmra.mxu1 %v2410_v51  ;;  %v1930_v56 = vadd.f32 %v4741_v47, %v5049_v52  ;;  %v2245_v51 = vld [vmem:[%s4955_s1 + $0x38] sm:$0xff] }
 0x345   :  { %2573 = vmatpush.bf16.msra.mxu3 %v2341_v19  ;;  %v5045_v19 = vld [vmem:[#allocation42_spill] sm:$0xff]  ;;  %v1933_v61 = vadd.f32 %v4741_v47, %v5046_v25  ;;  %v2397_v25 = vunpack.c.h.b16 %v2245_v51  ;;  %v5076_v49 = vld [vmem:[#allocation5_spill] sm:$0xff] }
 0x346   :  { %2526 = vmatpush.bf16.msrb.mxu2 %v5030_v48  ;;  %v2332_v26 = vpack.c.bf16 %v2155_v54, %v2154_v35  ;;  %v1940_v24 = vadd.f32 %v4741_v47, %v5045_v19  ;;  %v2217_v54 = vmax.f32 %v1930_v56, 0.0 }
 0x347   :  { %v2218_v11 = vmax.f32 %v1933_v61, 0.0  ;;  %v5065_v61 = vld [vmem:[#allocation31_spill] sm:$0xff] }
 0x348   :  { %v2221_v16 = vmax.f32 %v1940_v24, 0.0  ;;  %v2212_v24 = vmax.f32 %v1918_v55, 0.0 }
 0x349   :  { %2574 = vmatpush.bf16.msra.mxu3 %v2340_v45  ;;  %v2393_v45 = vunpack.c.h.b16 %v2243_v6  ;;  %v5066_v6 = vld [vmem:[#allocation13_spill] sm:$0xff] }
 0x34a   :  { %2527 = vmatpush.bf16.msrb.mxu2 %v5034_v42  ;;  %v1900_v42 = vadd.f32 %v4741_v47, %v5052_v4  ;;  %v1883_v50 = vadd.f32 %v4741_v47, %v5066_v6 }
 0x34b   :  { %v2409_v60 = vpack.c.b16 %v2393_v45, %v2393_v45  ;;  %v2200_v45 = vmax.f32 %v1888_v39, 0.0  ;;  %v1870_v39 = vadd.f32 %v4741_v47, %v5077_v17 }
 0x34c   :  { %v2205_v9 = vmax.f32 %v1900_v42, 0.0  ;;  %v2198_v42 = vmax.f32 %v1883_v50, 0.0 }
 0x34d   :  { %2575 = vmatpush.bf16.msra.mxu3 %v2339_v40  ;;  %v5051_v40 = vld [vmem:[#allocation19_spill] sm:$0xff] }
 0x34e   :  { %2528 = vmatpush.bf16.msrb.mxu2 %v5037_v44  ;;  %v1898_v57 = vadd.f32 %v4741_v47, %v5051_v40 }
 0x350   :  { %v2204_v15 = vmax.f32 %v1898_v57, 0.0  ;;  %v5071_v57 = vld [vmem:[#allocation12_spill] sm:$0xff] }
 0x351   :  { %2576 = vmatpush.bf16.msra.mxu3 %v2338_v23  ;;  %2529 = vmatmul.bf16.vlgmr.msrb.gmra.mxu2 %v2405_v0  ;;  %v5055_v23 = vld [vmem:[#allocation39_spill] sm:$0xff]  ;;  %v5056_v0 = vld [vmem:[#allocation17_spill] sm:$0xff]  ;;  %v1880_v4 = vadd.f32 %v4741_v47, %v5071_v57 }
 0x352   :  { %2560 = vmatpush.bf16.msra.mxu2 %v2333_v31  ;;  %v2364_v31 = vpack.c.bf16 %v2219_v58, %v2218_v11  ;;  %v1893_v44 = vadd.f32 %v4741_v47, %v5056_v0  ;;  %v2357_v3 = vpack.c.bf16 %v2205_v9, %v2204_v15  ;;  %v5075_v15 = vld [vmem:[#allocation8_spill] sm:$0xff] }
 0x353   :  { %v1875_v9 = vadd.f32 %v4741_v47, %v5075_v15  ;;  %v2197_v55 = vmax.f32 %v1880_v4, 0.0  ;;  %v3541_v4 = vld [vmem:[%s4957_s4 + $0x30] sm:$0xff] }
 0x354   :  { %v2202_v62 = vmax.f32 %v1893_v44, 0.0 }
 0x355   :  { %2577 = vmatpush.bf16.msra.mxu3 %v4633_v28  ;;  %v1938_v28 = vadd.f32 %v4741_v47, %v5044_v29  ;;  %v1913_v29 = vadd.f32 %v4741_v47, %v5063_v14 }
 0x356   :  { %2561 = vmatpush.bf16.msra.mxu2 %v2332_v26  ;;  %v2356_v56 = vpack.c.bf16 %v2203_v1, %v2202_v62 }
 0x357   :  { %v2220_v18 = vmax.f32 %v1938_v28, 0.0  ;;  %v5064_v28 = vld [vmem:[#allocation26_spill] sm:$0xff]  ;;  %v2210_v58 = vmax.f32 %v1913_v29, 0.0 }
 0x358   :  { %v1915_v19 = vadd.f32 %v4741_v47, %v5064_v28  ;;  %v5078_v28 = vld [vmem:[#allocation3_spill] sm:$0xff] }
 0x359   :  { %2578 = vmatpush.bf16.msra.mxu3 %v4611_v38  ;;  %v5048_v38 = vld [vmem:[#allocation32_spill] sm:$0xff]  ;;  %v2365_v53 = vpack.c.bf16 %v2221_v16, %v2220_v18  ;;  %v1885_v18 = vadd.f32 %v4741_v47, %v5067_v13  ;;  %v2413_v16 = vpack.c.b16 %v2397_v25, %v2397_v25 }
 0x35a   :  { %2562 = vmatpush.bf16.msra.mxu2 %v2331_v36  ;;  %v1928_v48 = vadd.f32 %v4741_v47, %v5048_v38  ;;  %v5062_v36 = vld [vmem:[#allocation16_spill] sm:$0xff] }
 0x35b   :  { %v1890_v2 = vadd.f32 %v4741_v47, %v5062_v36  ;;  %2633 = vmatmul.bf16.vlgmr.msra.gmra.mxu1 %v2413_v16  ;;  %v2199_v20 = vmax.f32 %v1885_v18, 0.0  ;;  %v2194_v36 = vmax.f32 %v1873_v43, 0.0 }
 0x35c   :  { %v2216_v35 = vmax.f32 %v1928_v48, 0.0  ;;  %v5068_v48 = vld [vmem:[#allocation23_spill] sm:$0xff] }
 0x35d   :  { %2579 = vmatpush.bf16.msra.mxu3 %v2335_v22  ;;  %v2439_v22 = vpop.f32.mrf.mxu1  ;;  %v2201_v38 = vmax.f32 %v1890_v2, 0.0  ;;  %v1908_v52 = vadd.f32 %v4741_v47, %v5068_v48  ;;  %v2354_v27 = vpack.c.bf16 %v2199_v20, %v2198_v42  ;;  %v2195_v2 = vmax.f32 %v1875_v9, 0.0  ;;  %v3537_v9 = vld [vmem:[%s4957_s4 + $0x10] sm:$0xff] }
 0x35e   :  { %2563 = vmatpush.bf16.msra.mxu2 %v2330_v12  ;;  %v2363_v26 = vpack.c.bf16 %v2217_v54, %v2216_v35  ;;  %v2213_v12 = vmax.f32 %v1920_v46, 0.0  ;;  %v5073_v35 = vld [vmem:[#allocation22_spill] sm:$0xff] }
 0x35f   :  { %v2355_v41 = vpack.c.bf16 %v2201_v38, %v2200_v45  ;;  %v1905_v54 = vadd.f32 %v4741_v47, %v5073_v35  ;;  %v2452_v29 = vpop.f32.mrf.mxu2  ;;  %v2352_v25 = vpack.c.bf16 %v2195_v2, %v2194_v36  ;;  %v2395_v45 = vunpack.c.h.b16 %v4841_v34  ;;  %v3542_v34 = vld [vmem:[%s4957_s4 + $0x38] sm:$0xff]  ;;  %v3540_v35 = vld [vmem:[%s4957_s4 + $0x28] sm:$0xff] }
 0x361   :  { %2580 = vmatpush.bf16.msra.mxu3 %v2334_v8  ;;  %v5069_v8 = vld [vmem:[#allocation24_spill] sm:$0xff]  ;;  %v2207_v46 = vmax.f32 %v1905_v54, 0.0 }
 0x362   :  { %2564 = vmatpush.bf16.msra.mxu2 %v5050_v33  ;;  %v1910_v11 = vadd.f32 %v4741_v47, %v5069_v8  ;;  %v5070_v33 = vld [vmem:[#allocation10_spill] sm:$0xff] }
 0x363   :  { %v1878_v40 = vadd.f32 %v4741_v47, %v5070_v33  ;;  %v2358_v1 = vpack.c.bf16 %v2207_v46, %v2206_v59  ;;  %v3536_v46 = vld [vmem:[%s4957_s4 + $0x8] sm:$0xff] }
 0x364   :  { %2581 = vmatmul.bf16.vlgmr.msra.gmra.mxu3 %v2409_v60  ;;  %v2361_v60 = vpack.c.bf16 %v2213_v12, %v2212_v24  ;;  %v2453_v24 = vadd.f32 %v2452_v29, %v2439_v22 }
 0x365   :  { %2612 = vmatpush.bf16.msrb.mxu3 %v2365_v53  ;;  %v2211_v53 = vmax.f32 %v1915_v19, 0.0  ;;  %v2441_v44 = vpop.f32.mrf.mxu1  ;;  %v2196_v63 = vmax.f32 %v1878_v40, 0.0  ;;  %v1863_v19 = vadd.f32 %v4741_v47, %v5078_v28 }
 0x366   :  { %2565 = vmatpush.bf16.msra.mxu2 %v5055_v23  ;;  %v2209_v23 = vmax.f32 %v1910_v11, 0.0 }
 0x367   :  { %v2360_v0 = vpack.c.bf16 %v2211_v53, %v2210_v58  ;;  %v2353_v62 = vpack.c.bf16 %v2197_v55, %v2196_v63  ;;  %v2190_v13 = vmax.f32 %v1863_v19, 0.0  ;;  %v2454_v48 = vpop.f32.mrf.mxu2  ;;  %v3553_v19 = vld [vmem:[%s4956_s5] ss:$0 sm:$0xff] }
 0x369   :  { %2613 = vmatpush.bf16.msrb.mxu3 %v2364_v31  ;;  %v2208_v31 = vmax.f32 %v1908_v52, 0.0 }
 0x36a   :  { %2566 = vmatpush.bf16.msra.mxu2 %v5060_v21  ;;  %v1868_v21 = vadd.f32 %v4741_v47, %v5076_v49 }
 0x36b   :  { %v2359_v10 = vpack.c.bf16 %v2209_v23, %v2208_v31  ;;  %v3539_v23 = vld [vmem:[%s4957_s4 + $0x20] sm:$0xff] }
 0x36d   :  { %2614 = vmatpush.bf16.msrb.mxu3 %v2363_v26  ;;  %v2396_v26 = vunpack.c.l.b16 %v2245_v51  ;;  %v2478_v14 = vpop.f32.mrf.mxu1  ;;  %v5079_v51 = vld [vmem:[#allocation4_spill] sm:$0xff] }
 0x36e   :  { %2567 = vmatpush.bf16.msra.mxu2 %v5065_v61  ;;  %v1865_v12 = vadd.f32 %v4741_v47, %v5079_v51  ;;  %v2465_v61 = vpop.f32.mrf.mxu3 }
 0x36f   :  { %v2466_v6 = vadd.f32 %v2465_v61, %v2453_v24 }
 0x370   :  { %v2191_v18 = vmax.f32 %v1865_v12, 0.0 }
 0x371   :  { %2615 = vmatpush.bf16.msrb.mxu3 %v2362_v32  ;;  %2568 = vmatmul.bf16.vlgmr.msra.gmra.mxu2 %v2408_v7  ;;  %v2192_v32 = vmax.f32 %v1868_v21, 0.0  ;;  %v2193_v7 = vmax.f32 %v1870_v39, 0.0  ;;  %v2479_v50 = vadd.f32 %v2478_v14, %v2466_v6 }
 0x372   :  { %2599 = vmatpush.bf16.msrb.mxu2 %v2357_v3  ;;  %v2412_v3 = vpack.c.b16 %v2396_v26, %v2396_v26  ;;  %v2350_v22 = vpack.c.bf16 %v2191_v18, %v2190_v13 }
 0x373   :  { %v2351_v16 = vpack.c.bf16 %v2193_v7, %v2192_v32 }
 0x375   :  { %2616 = vmatpush.bf16.msrb.mxu3 %v2361_v60  ;;  %v2480_v38 = vpop.f32.mrf.mxu1 }
 0x376   :  { %2600 = vmatpush.bf16.msrb.mxu2 %v2356_v56  ;;  %v2467_v52 = vpop.f32.mrf.mxu3  ;;  %v2411_v56 = vpack.c.b16 %v2395_v45, %v2395_v45 }
 0x379   :  { %2617 = vmatpush.bf16.msrb.mxu3 %v2360_v0 }
 0x37a   :  { %2601 = vmatpush.bf16.msrb.mxu2 %v2355_v41 }
 0x37d   :  { %2618 = vmatpush.bf16.msrb.mxu3 %v2359_v10  ;;  %v2517_v47 = vpop.f32.mrf.mxu1  ;;  %v3535_v10 = vld [vmem:[%s4957_s4] sm:$0xff] }
 0x37e   :  { %2602 = vmatpush.bf16.msrb.mxu2 %v2354_v27 }
 0x381   :  { %2619 = vmatpush.bf16.msrb.mxu3 %v2358_v1 }
 0x382   :  { %2603 = vmatpush.bf16.msrb.mxu2 %v2353_v62 }
 0x384   :  { %2620 = vmatmul.bf16.vlgmr.msrb.gmra.mxu3 %v2412_v3 }
 0x385   :  { %v2519_v8 = vpop.f32.mrf.mxu1 }
 0x386   :  { %2604 = vmatpush.bf16.msrb.mxu2 %v2352_v25 }
 0x38a   :  { %2605 = vmatpush.bf16.msrb.mxu2 %v2351_v16 }
 0x38d   :  { %v2556_v60 = vpop.f32.mrf.mxu1 }
 0x38e   :  { %2606 = vmatpush.bf16.msrb.mxu2 %v2350_v22 }
 0x391   :  { %2607 = vmatmul.bf16.vlgmr.msrb.gmra.mxu2 %v2411_v56 }
 0x392   :  { %2707 = vmatpush.bf16.msra.mxu2 %v3542_v34 }
 0x395   :  { %v2558_v20 = vpop.f32.mrf.mxu1 }
 0x396   :  { %2708 = vmatpush.bf16.msra.mxu2 %v3541_v4 }
 0x39a   :  { %2709 = vmatpush.bf16.msra.mxu2 %v3540_v35 }
 0x39e   :  { %2710 = vmatpush.bf16.msra.mxu2 %v3539_v23 }
 0x3a2   :  { %2711 = vmatpush.bf16.msra.mxu2 %v3538_v37 }
 0x3a6   :  { %2712 = vmatpush.bf16.msra.mxu2 %v3537_v9 }
 0x3a7   :  { %v2504_v11 = vpop.f32.mrf.mxu3 }
 0x3aa   :  { %2713 = vmatpush.bf16.msra.mxu2 %v3536_v46 }
 0x3ae   :  { %2714 = vmatpush.bf16.msra.mxu2 %v3535_v10 }
 0x3af   :  { %v2506_v58 = vpop.f32.mrf.mxu3 }
 0x3b4   :  { %v2491_v53 = vpop.f32.mrf.mxu2 }
 0x3b5   :  { %v2492_v33 = vadd.f32 %v2491_v53, %v2479_v50 }
 0x3b7   :  { %v2505_v40 = vadd.f32 %v2504_v11, %v2492_v33 }
 0x3b9   :  { %v2518_v57 = vadd.f32 %v2517_v47, %v2505_v40 }
 0x3bc   :  { %v2493_v42 = vpop.f32.mrf.mxu2 }
 0x3c1   :  { %v2595_v31 = vpop.f32.mrf.mxu1 }
 0x3c7   :  { %v2543_v5 = vpop.f32.mrf.mxu3 }
 0x3c9   :  { %v2597_v15 = vpop.f32.mrf.mxu1 }
 0x3cf   :  { %v2545_v30 = vpop.f32.mrf.mxu3 }
 0x3d4   :  { %v2530_v41 = vpop.f32.mrf.mxu2 }
 0x3d5   :  { %v2531_v54 = vadd.f32 %v2530_v41, %v2518_v57 }
 0x3d7   :  { %v2544_v0 = vadd.f32 %v2543_v5, %v2531_v54 }
 0x3d8   :  { %v2634_v55 = vpop.f32.mrf.mxu1 }
 0x3d9   :  { %v2557_v44 = vadd.f32 %v2556_v60, %v2544_v0 }
 0x3dc   :  { %v2532_v43 = vpop.f32.mrf.mxu2 }
 0x3e0   :  { %v2636_v26 = vpop.f32.mrf.mxu1 }
 0x3e7   :  { %v2582_v63 = vpop.f32.mrf.mxu3 }
 0x3ef   :  { %v2584_v59 = vpop.f32.mrf.mxu3 }
 0x3f4   :  { %v2569_v27 = vpop.f32.mrf.mxu2 }
 0x3f5   :  { %v2570_v17 = vadd.f32 %v2569_v27, %v2557_v44 }
 0x3f7   :  { %v2583_v39 = vadd.f32 %v2582_v63, %v2570_v17 }
 0x3f9   :  { %v2596_v2 = vadd.f32 %v2595_v31, %v2583_v39 }
 0x3fc   :  { %v2571_v49 = vpop.f32.mrf.mxu2 }
 0x407   :  { %v2621_v21 = vpop.f32.mrf.mxu3 }
 0x40f   :  { %v2623_v36 = vpop.f32.mrf.mxu3 }
 0x414   :  { %v2608_v62 = vpop.f32.mrf.mxu2 }
 0x415   :  { %v2609_v1 = vadd.f32 %v2608_v62, %v2596_v2 }
 0x417   :  { %v2622_v3 = vadd.f32 %v2621_v21, %v2609_v1 }
 0x419   :  { %v2635_v14 = vadd.f32 %v2634_v55, %v2622_v3 }
 0x41b   :  { %v2638_v29 = vpack.c.bf16 %v2635_v14, %v2635_v14 }
 0x41c   :  { %v2610_v28 = vpop.f32.mrf.mxu2 }
 0x41d   :  { %2715 = vmatmul.bf16.vlgmr.msra.gmra.mxu2 %v2638_v29 }
 0x4a0   :  { %v2716_v24 = vpop.f32.mrf.mxu2 }
 0x4a1   :  { %v2717_v51 = vadd.f32 %v3553_v19, %v2716_v24 }
 0x4a3   :  { %2720 = vst [vmem:[%s4958_s6] sm:$0xff] %v2717_v51 }
 0x4a8   :  { %v2718_v12 = vpop.f32.mrf.mxu2 }

</bundles_post_ra>
